<compile_context>
chip_gen: v7x
topology: tpu7x:2x2x1
jax: 0.10.0
libtpu: 0.0.40
codegen_flags: <defaults>
</compile_context>

<pallas_src>
import math
from functools import partial

import jax
import jax.numpy as jnp
from jax.experimental import pallas as pl
from jax.experimental.pallas import tpu as pltpu


# Set to jnp.bfloat16 on v6e/v7x at production shapes (D=512, FF=1024) for
# native-rate MXU and halved VMEM/DMA traffic; f32 keeps exact parity with the
# PyTorch reference at toy shapes.
_MATMUL_DTYPE = jnp.float32


def _vmem_spec():
    return pl.BlockSpec(memory_space=pltpu.MemorySpace.VMEM)


def _mm(a, b):
    """a @ b on the MXU with f32 accumulation."""
    return jnp.dot(a.astype(_MATMUL_DTYPE), b.astype(_MATMUL_DTYPE),
                   preferred_element_type=jnp.float32)


def _mm_t(a, b):
    """a @ b.T (contract last dims) with f32 accumulation."""
    return jax.lax.dot_general(
        a.astype(_MATMUL_DTYPE), b.astype(_MATMUL_DTYPE),
        (((1,), (1,)), ((), ())), preferred_element_type=jnp.float32)


def _gelu(x):
    # PyTorch F.gelu default: exact erf-based gelu.
    return 0.5 * x * (1.0 + jax.lax.erf(x * 0.7071067811865476))


# --------------------------------------------------------------------------
# 1. Fused pre-processing kernel.
#    Inputs are pre-flattened in the wrapper so every projection is one
#    batched matmul; only the tiny per-batch concats are unrolled.
#    Outputs: xseq [B, T+1, D] and cross-attention memory [B, Tc+1, D].
# --------------------------------------------------------------------------
def _prep_kernel(tpe_ref, cond_ref, x_ref, pe_ref,
                 te_w1_ref, te_b1_ref, te_w2_ref, te_b2_ref,
                 cp_w_ref, cp_b_ref, em_w_ref, em_b_ref,
                 ip_w_ref, ip_b_ref,
                 xseq_ref, mem_ref, *, keep_cond, batch, t_cond, t_seq):
    D = em_b_ref.shape[1]

    # --- timestep tokens: time_embed(pe[timesteps]) -> [B, D]
    th = _mm(tpe_ref[...], te_w1_ref[...]) + te_b1_ref[...]
    th = th * jax.nn.sigmoid(th)                               # SiLU
    ttok = _mm(th, te_w2_ref[...]) + te_b2_ref[...]            # [B, D]

    # --- input process: [B*T, Fin] -> [B*T, D]
    xe = _mm(x_ref[...], ip_w_ref[...]) + ip_b_ref[...]
    pe = pe_ref[...]                                           # [T+1, D]

    # --- cond projection + eval-mode mask_cond + embed_motion
    if keep_cond:
        cond = _mm(cond_ref[...], cp_w_ref[...]) + cp_b_ref[...]   # [B*Tc, D]
        em = _mm(cond, em_w_ref[...]) + em_b_ref[...]              # [B*Tc, D]
    else:
        # cond_mask_prob == 1.0: cond tokens are zeroed, embed_motion(0) = bias
        em = jnp.broadcast_to(em_b_ref[...], (batch * t_cond, D))
    # TODO(synk): training-mode Bernoulli cond masking not implemented
    #             (eval-mode semantics only).

    for b in range(batch):                         # tiny static batch, unrolled
        em_b = em[b * t_cond:(b + 1) * t_cond]                 # [Tc, D]
        tt = ttok[b:b + 1]                                     # [1, D]
        mem_ref[b] = jnp.concatenate([em_b, tt], axis=0)       # [Tc+1, D]

        # mean(embed_motion(cond)) + t_token   (affine => mean commutes)
        emb = jnp.mean(em_b, axis=0, keepdims=True) + tt       # [1, D]
        xe_b = xe[b * t_seq:(b + 1) * t_seq]                   # [T, D]
        xseq_ref[b] = jnp.concatenate([emb, xe_b], axis=0) + pe


# --------------------------------------------------------------------------
# 2. Whole TransformerDecoder stack in one kernel.
#    grid = (B, num_layers); layer axis innermost ("arbitrary"), batch axis
#    "parallel".  Hidden state carried in a VMEM scratch across layers.
#    Post-norm, gelu, eval-mode dropout (no-op).
# --------------------------------------------------------------------------
def _decoder_stack_kernel(x_ref, mem_ref,
                          sa_wqkv_ref, sa_bqkv_ref, sa_wo_ref, sa_bo_ref,
                          ln1_g_ref, ln1_b_ref,
                          ca_wq_ref, ca_bq_ref, ca_wkv_ref, ca_bkv_ref,
                          ca_wo_ref, ca_bo_ref, ln2_g_ref, ln2_b_ref,
                          ff_w1_ref, ff_b1_ref, ff_w2_ref, ff_b2_ref,
                          ln3_g_ref, ln3_b_ref,
                          o_ref, h_ref, *, num_heads):
    layer = pl.program_id(1)
    D = h_ref.shape[1]
    Dh = D // num_heads
    scale = 1.0 / math.sqrt(Dh)

    @pl.when(layer == 0)
    def _():
        h_ref[...] = x_ref[0]

    def layer_norm(t, g, b):
        mu = jnp.mean(t, axis=-1, keepdims=True)
        var = jnp.mean(jnp.square(t - mu), axis=-1, keepdims=True)
        return (t - mu) * jax.lax.rsqrt(var + 1e-5) * g + b

    def softmax(s):
        s = s - jnp.max(s, axis=-1, keepdims=True)
        p = jnp.exp(s)
        return p * pl.reciprocal(jnp.sum(p, axis=-1, keepdims=True), approx=True)

    def mha(q, k, v, wo, bo):
        # Heads split on the lane dim; output projection folded per head
        # (avoids a lane-dim concat).
        out = None
        for hd in range(num_heads):
            lo, hi = hd * Dh, (hd + 1) * Dh
            s = _mm_t(q[:, lo:hi], k[:, lo:hi]) * scale         # [Lq, Lk]
            p = softmax(s)
            oh = _mm(p, v[:, lo:hi])                            # [Lq, Dh]
            contrib = _mm(oh, wo[lo:hi, :])                     # [Lq, D]
            out = contrib if out is None else out + contrib
        return out + bo

    x = h_ref[...]          # [L, D]
    mem = mem_ref[0]        # [S, D]

    # --- self-attention (fused QKV projection) ---
    qkv = _mm(x, sa_wqkv_ref[0]) + sa_bqkv_ref[0]               # [L, 3D]
    sa = mha(qkv[:, :D], qkv[:, D:2 * D], qkv[:, 2 * D:],
             sa_wo_ref[0], sa_bo_ref[0])
    x = layer_norm(x + sa, ln1_g_ref[0], ln1_b_ref[0])

    # --- cross-attention (fused KV projection on memory) ---
    qc = _mm(x, ca_wq_ref[0]) + ca_bq_ref[0]                    # [L, D]
    kv = _mm(mem, ca_wkv_ref[0]) + ca_bkv_ref[0]                # [S, 2D]
    ca = mha(qc, kv[:, :D], kv[:, D:], ca_wo_ref[0], ca_bo_ref[0])
    x = layer_norm(x + ca, ln2_g_ref[0], ln2_b_ref[0])

    # --- feed-forward (gelu) ---
    h1 = _gelu(_mm(x, ff_w1_ref[0]) + ff_b1_ref[0])
    ff = _mm(h1, ff_w2_ref[0]) + ff_b2_ref[0]
    x = layer_norm(x + ff, ln3_g_ref[0], ln3_b_ref[0])

    h_ref[...] = x

    @pl.when(layer == pl.num_programs(1) - 1)
    def _():
        o_ref[0] = x


# --------------------------------------------------------------------------
# 3. Fused output kernel: drop the emb token and apply the output projection.
#    h comes in flattened [B*(T+1), D] so the projection is one matmul.
# --------------------------------------------------------------------------
def _output_kernel(h_ref, w_ref, b_ref, o_ref, *, seq_len):
    B = o_ref.shape[0]
    proj = _mm(h_ref[...], w_ref[...]) + b_ref[...]        # [B*(T+1), Fin]
    lp1 = seq_len + 1
    for b in range(B):
        start = b * lp1 + 1                                # skip emb token
        o_ref[b] = proj[start:start + seq_len, :]


# --------------------------------------------------------------------------
# Wrappers
# --------------------------------------------------------------------------
_LAYER_KEYS = ("sa_wqkv", "sa_bqkv", "sa_wo", "sa_bo", "ln1_g", "ln1_b",
               "ca_wq", "ca_bq", "ca_wkv", "ca_bkv", "ca_wo", "ca_bo",
               "ln2_g", "ln2_b",
               "ff_w1", "ff_b1", "ff_w2", "ff_b2", "ln3_g", "ln3_b")


def decoder_stack(x, memory, stacked, num_heads):
    """x: [B, L, D]; memory: [B, S, D]; stacked: dict of [NL, ...] weights."""
    B, L, D = x.shape
    S = memory.shape[1]
    weights = [stacked[k] for k in _LAYER_KEYS]
    NL = weights[0].shape[0]

    def wspec(arr):
        nd = arr.ndim - 1
        return pl.BlockSpec((1,) + arr.shape[1:],
                            lambda b, l, _nd=nd: (l,) + (0,) * _nd)

    return pl.pallas_call(
        partial(_decoder_stack_kernel, num_heads=num_heads),
        out_shape=jax.ShapeDtypeStruct((B, L, D), jnp.float32),
        grid=(B, NL),
        in_specs=[pl.BlockSpec((1, L, D), lambda b, l: (b, 0, 0)),
                  pl.BlockSpec((1, S, D), lambda b, l: (b, 0, 0))]
                 + [wspec(w) for w in weights],
        out_specs=pl.BlockSpec((1, L, D), lambda b, l: (b, 0, 0)),
        scratch_shapes=[pltpu.VMEM((L, D), jnp.float32)],
        compiler_params=pltpu.CompilerParams(
            dimension_semantics=("parallel", "arbitrary")),
    )(x, memory, *weights)


# --------------------------------------------------------------------------
# Parameters
# --------------------------------------------------------------------------
def make_pe_table(max_len, d):
    pos = jnp.arange(max_len, dtype=jnp.float32)[:, None]
    div = jnp.exp(jnp.arange(0, d, 2, dtype=jnp.float32) * (-math.log(10000.0) / d))
    pe = jnp.zeros((max_len, d), jnp.float32)
    pe = pe.at[:, 0::2].set(jnp.sin(pos * div))
    pe = pe.at[:, 1::2].set(jnp.cos(pos * div))
    return pe  # [max_len, d]


def init_params(key, njoints, nfeats, latent_dim, ff_size, num_layers, max_len=1000):
    input_feats = njoints * nfeats
    keys = iter(jax.random.split(key, 256))

    def lin(din, dout, scale=0.02):
        w = scale * jax.random.normal(next(keys), (din, dout), jnp.float32)
        b = scale * jax.random.normal(next(keys), (1, dout), jnp.float32)
        return w, b

    params = {"pe": make_pe_table(max_len, latent_dim)}
    params["ip_w"], params["ip_b"] = lin(input_feats, latent_dim)   # InputProcess
    params["cp_w"], params["cp_b"] = lin(input_feats, latent_dim)   # CondProjection
    params["te_w1"], params["te_b1"] = lin(latent_dim, latent_dim)  # TimestepEmbedder
    params["te_w2"], params["te_b2"] = lin(latent_dim, latent_dim)
    params["em_w"], params["em_b"] = lin(latent_dim, latent_dim)    # embed_motion
    params["op_w"], params["op_b"] = lin(latent_dim, input_feats)   # OutputProcess

    ones = jnp.ones((1, latent_dim), jnp.float32)
    zeros = jnp.zeros((1, latent_dim), jnp.float32)

    per_layer = []
    for _ in range(num_layers):
        sa_wqkv, sa_bqkv = lin(latent_dim, 3 * latent_dim)   # fused Q|K|V
        sa_wo, sa_bo = lin(latent_dim, latent_dim)
        ca_wq, ca_bq = lin(latent_dim, latent_dim)
        ca_wkv, ca_bkv = lin(latent_dim, 2 * latent_dim)     # fused K|V (memory)
        ca_wo, ca_bo = lin(latent_dim, latent_dim)
        ff_w1, ff_b1 = lin(latent_dim, ff_size)
        ff_w2, ff_b2 = lin(ff_size, latent_dim)
        per_layer.append(dict(
            sa_wqkv=sa_wqkv, sa_bqkv=sa_bqkv, sa_wo=sa_wo, sa_bo=sa_bo,
            ca_wq=ca_wq, ca_bq=ca_bq, ca_wkv=ca_wkv, ca_bkv=ca_bkv,
            ca_wo=ca_wo, ca_bo=ca_bo,
            ff_w1=ff_w1, ff_b1=ff_b1, ff_w2=ff_w2, ff_b2=ff_b2,
            ln1_g=ones, ln1_b=zeros, ln2_g=ones, ln2_b=zeros,
            ln3_g=ones, ln3_b=zeros,
        ))
    # stack per-layer weights along a leading layer axis (blocked by the
    # decoder-stack kernel's layer grid axis)
    params["layers"] = {k: jnp.stack([lp[k] for lp in per_layer], axis=0)
                        for k in _LAYER_KEYS}
    return params


# --------------------------------------------------------------------------
# Forward
# --------------------------------------------------------------------------
@partial(jax.jit, static_argnames=("cond_mask_prob", "num_heads"))
def cond_proj_decoder_m2mdm_forward(x, timesteps, y_motion, *, cond_mask_prob,
                                    params, num_heads):
    """
    x:         [B, njoints, nfeats, T]
    timesteps: [B] int
    y_motion:  [B, njoints, nfeats, Tc]   (y['motion'])
    returns    [B, njoints, nfeats, T]
    """
    B, nj, nf, T = x.shape
    Tc = y_motion.shape[-1]
    Fin = nj * nf
    D = params["ip_w"].shape[1]

    # single XLA transpose/reshape per motion tensor -> batched feature rows
    x_flat = jnp.transpose(x, (0, 3, 1, 2)).reshape(B * T, Fin)
    cond_flat = jnp.transpose(y_motion, (0, 3, 1, 2)).reshape(B * Tc, Fin)
    tpe = params["pe"][timesteps]          # [B, D]  (tiny XLA gather)
    pe_seq = params["pe"][: T + 1]         # [T+1, D]

    keep_cond = (cond_mask_prob != 1.0)

    prep_weights = [params[k] for k in ("te_w1", "te_b1", "te_w2", "te_b2",
                                        "cp_w", "cp_b", "em_w", "em_b",
                                        "ip_w", "ip_b")]
    xseq, memory = pl.pallas_call(
        partial(_prep_kernel, keep_cond=keep_cond, batch=B, t_cond=Tc, t_seq=T),
        out_shape=(jax.ShapeDtypeStruct((B, T + 1, D), jnp.float32),
                   jax.ShapeDtypeStruct((B, Tc + 1, D), jnp.float32)),
        in_specs=[_vmem_spec() for _ in range(4 + len(prep_weights))],
        out_specs=(_vmem_spec(), _vmem_spec()),
    )(tpe, cond_flat, x_flat, pe_seq, *prep_weights)

    # transformer decoder stack (no tgt/memory masks, no final norm) — one call
    h = decoder_stack(xseq, memory, params["layers"], num_heads)

    h_flat = h.reshape(B * (T + 1), D)
    out = pl.pallas_call(
        partial(_output_kernel, seq_len=T),
        out_shape=jax.ShapeDtypeStruct((B, T, Fin), jnp.float32),
        in_specs=[_vmem_spec(), _vmem_spec(), _vmem_spec()],
        out_specs=_vmem_spec(),
    )(h_flat, params["op_w"], params["op_b"])

    # [B, T, Fin] -> [B, njoints, nfeats, T]
    return jnp.transpose(out.reshape(B, T, nj, nf), (0, 2, 3, 1))


# --------------------------------------------------------------------------
# Main
# --------------------------------------------------------------------------
if __name__ == "__main__":
    # small shapes consistent with the module (rot6d motion data)
    B, NJ, NF, T = 2, 4, 6, 8      # batch, njoints, nfeats(rot6d-ish), frames
    TC = 8                         # conditioning motion frames
    LATENT, FF, NLAYERS, NHEADS = 32, 64, 2, 4

    key = jax.random.PRNGKey(0)
    kx, kc, kt, kp = jax.random.split(key, 4)
    x = jax.random.normal(kx, (B, NJ, NF, T), jnp.float32)
    cond_motion = jax.random.normal(kc, (B, NJ, NF, TC), jnp.float32)
    timesteps = jax.random.randint(kt, (B,), 0, 1000)

    params = init_params(kp, NJ, NF, LATENT, FF, NLAYERS)

    out = cond_proj_decoder_m2mdm_forward(
        x, timesteps, cond_motion, cond_mask_prob=0.0, params=params,
        num_heads=NHEADS)
    out = jax.block_until_ready(out)

    assert out.shape == (B, NJ, NF, T), out.shape
    assert out.dtype == jnp.float32
    assert bool(jnp.all(jnp.isfinite(out)))

    # also exercise the unconditioned (cond_mask_prob == 1.0) path
    out_unc = jax.block_until_ready(cond_proj_decoder_m2mdm_forward(
        x, timesteps, cond_motion, cond_mask_prob=1.0, params=params,
        num_heads=NHEADS))
    assert out_unc.shape == (B, NJ, NF, T)
    assert bool(jnp.all(jnp.isfinite(out_unc)))

    print("KERNEL_OK")
</pallas_src>

<mosaic_0001>
module attributes {stable_mosaic.version = 11 : i64} {
  func.func @_output_kernel(%arg0: memref<18x32xf32, #tpu.memory_space<vmem>>, %arg1: memref<32x24xf32, #tpu.memory_space<vmem>>, %arg2: memref<1x24xf32, #tpu.memory_space<vmem>>, %arg3: memref<2x8x24xf32, #tpu.memory_space<vmem>>) attributes {dimension_semantics = [], scalar_prefetch = 0 : i64, scratch_operands = 0 : i64, tpu.core_type = #tpu.core_type<tc>} {
    %c0 = arith.constant 0 : index
    %c0_0 = arith.constant 0 : index
    %0 = vector.load %arg0[%c0, %c0_0] : memref<18x32xf32, #tpu.memory_space<vmem>>, vector<18x32xf32>
    %c0_1 = arith.constant 0 : index
    %c0_2 = arith.constant 0 : index
    %1 = vector.load %arg1[%c0_1, %c0_2] : memref<32x24xf32, #tpu.memory_space<vmem>>, vector<32x24xf32>
    %cst = arith.constant dense<0.000000e+00> : vector<18x24xf32>
    %2 = tpu.matmul %0, %1, %cst {dimension_numbers = #tpu.dot_dimension_numbers<[1], [0], [0], [1], [0, 0, 1, 1], [], []>} : vector<18x32xf32>, vector<32x24xf32>, vector<18x24xf32> -> vector<18x24xf32>
    %c0_3 = arith.constant 0 : index
    %c0_4 = arith.constant 0 : index
    %3 = vector.load %arg2[%c0_3, %c0_4] : memref<1x24xf32, #tpu.memory_space<vmem>>, vector<1x24xf32>
    %4 = vector.broadcast %3 : vector<1x24xf32> to vector<18x24xf32>
    %5 = arith.addf %2, %4 : vector<18x24xf32>
    %6 = vector.extract_strided_slice %5 {offsets = [1, 0], sizes = [8, 24], strides = [1, 1]} : vector<18x24xf32> to vector<8x24xf32>
    %c0_5 = arith.constant 0 : index
    %c0_6 = arith.constant 0 : index
    %c0_7 = arith.constant 0 : index
    %7 = vector.load %arg3[%c0_5, %c0_6, %c0_7] : memref<2x8x24xf32, #tpu.memory_space<vmem>>, vector<1x8x24xf32>
    %8 = vector.shape_cast %7 : vector<1x8x24xf32> to vector<8x24xf32>
    %9 = vector.shape_cast %6 : vector<8x24xf32> to vector<1x8x24xf32>
    tpu.vector_store %arg3[%c0_5, %c0_6, %c0_7], %9 {strides = array<i32>} : memref<2x8x24xf32, #tpu.memory_space<vmem>>, vector<1x8x24xf32>,
    %10 = vector.extract_strided_slice %5 {offsets = [10, 0], sizes = [8, 24], strides = [1, 1]} : vector<18x24xf32> to vector<8x24xf32>
    %c1 = arith.constant 1 : index
    %c0_8 = arith.constant 0 : index
    %c0_9 = arith.constant 0 : index
    %11 = vector.load %arg3[%c1, %c0_8, %c0_9] : memref<2x8x24xf32, #tpu.memory_space<vmem>>, vector<1x8x24xf32>
    %12 = vector.shape_cast %11 : vector<1x8x24xf32> to vector<8x24xf32>
    %13 = vector.shape_cast %10 : vector<8x24xf32> to vector<1x8x24xf32>
    tpu.vector_store %arg3[%c1, %c0_8, %c0_9], %13 {strides = array<i32>} : memref<2x8x24xf32, #tpu.memory_space<vmem>>, vector<1x8x24xf32>,
    return
  }
}

module attributes {stable_mosaic.version = 11 : i64} {
  func.func @_prep_kernel(%arg0: memref<2x32xf32, #tpu.memory_space<vmem>>, %arg1: memref<16x24xf32, #tpu.memory_space<vmem>>, %arg2: memref<16x24xf32, #tpu.memory_space<vmem>>, %arg3: memref<9x32xf32, #tpu.memory_space<vmem>>, %arg4: memref<32x32xf32, #tpu.memory_space<vmem>>, %arg5: memref<1x32xf32, #tpu.memory_space<vmem>>, %arg6: memref<32x32xf32, #tpu.memory_space<vmem>>, %arg7: memref<1x32xf32, #tpu.memory_space<vmem>>, %arg8: memref<24x32xf32, #tpu.memory_space<vmem>>, %arg9: memref<1x32xf32, #tpu.memory_space<vmem>>, %arg10: memref<32x32xf32, #tpu.memory_space<vmem>>, %arg11: memref<1x32xf32, #tpu.memory_space<vmem>>, %arg12: memref<24x32xf32, #tpu.memory_space<vmem>>, %arg13: memref<1x32xf32, #tpu.memory_space<vmem>>, %arg14: memref<2x9x32xf32, #tpu.memory_space<vmem>>, %arg15: memref<2x9x32xf32, #tpu.memory_space<vmem>>) attributes {dimension_semantics = [], scalar_prefetch = 0 : i64, scratch_operands = 0 : i64, tpu.core_type = #tpu.core_type<tc>} {
    %c0 = arith.constant 0 : index
    %c0_0 = arith.constant 0 : index
    %0 = vector.load %arg0[%c0, %c0_0] : memref<2x32xf32, #tpu.memory_space<vmem>>, vector<2x32xf32>
    %c0_1 = arith.constant 0 : index
    %c0_2 = arith.constant 0 : index
    %1 = vector.load %arg4[%c0_1, %c0_2] : memref<32x32xf32, #tpu.memory_space<vmem>>, vector<32x32xf32>
    %cst = arith.constant dense<0.000000e+00> : vector<2x32xf32>
    %2 = tpu.matmul %0, %1, %cst {dimension_numbers = #tpu.dot_dimension_numbers<[1], [0], [0], [1], [0, 0, 1, 1], [], []>} : vector<2x32xf32>, vector<32x32xf32>, vector<2x32xf32> -> vector<2x32xf32>
    %c0_3 = arith.constant 0 : index
    %c0_4 = arith.constant 0 : index
    %3 = vector.load %arg5[%c0_3, %c0_4] : memref<1x32xf32, #tpu.memory_space<vmem>>, vector<1x32xf32>
    %4 = vector.broadcast %3 : vector<1x32xf32> to vector<2x32xf32>
    %5 = arith.addf %2, %4 : vector<2x32xf32>
    %6 = arith.negf %5 : vector<2x32xf32>
    %7 = math.exp %6 : vector<2x32xf32>
    %cst_5 = arith.constant 1.000000e+00 : f32
    %8 = vector.broadcast %cst_5 : f32 to vector<2x32xf32>
    %9 = arith.addf %8, %7 : vector<2x32xf32>
    %10 = arith.divf %8, %9 : vector<2x32xf32>
    %11 = arith.mulf %5, %10 : vector<2x32xf32>
    %c0_6 = arith.constant 0 : index
    %c0_7 = arith.constant 0 : index
    %12 = vector.load %arg6[%c0_6, %c0_7] : memref<32x32xf32, #tpu.memory_space<vmem>>, vector<32x32xf32>
    %cst_8 = arith.constant dense<0.000000e+00> : vector<2x32xf32>
    %13 = tpu.matmul %11, %12, %cst_8 {dimension_numbers = #tpu.dot_dimension_numbers<[1], [0], [0], [1], [0, 0, 1, 1], [], []>} : vector<2x32xf32>, vector<32x32xf32>, vector<2x32xf32> -> vector<2x32xf32>
    %c0_9 = arith.constant 0 : index
    %c0_10 = arith.constant 0 : index
    %14 = vector.load %arg7[%c0_9, %c0_10] : memref<1x32xf32, #tpu.memory_space<vmem>>, vector<1x32xf32>
    %15 = vector.broadcast %14 : vector<1x32xf32> to vector<2x32xf32>
    %16 = arith.addf %13, %15 : vector<2x32xf32>
    %c0_11 = arith.constant 0 : index
    %c0_12 = arith.constant 0 : index
    %17 = vector.load %arg2[%c0_11, %c0_12] : memref<16x24xf32, #tpu.memory_space<vmem>>, vector<16x24xf32>
    %c0_13 = arith.constant 0 : index
    %c0_14 = arith.constant 0 : index
    %18 = vector.load %arg12[%c0_13, %c0_14] : memref<24x32xf32, #tpu.memory_space<vmem>>, vector<24x32xf32>
    %cst_15 = arith.constant dense<0.000000e+00> : vector<16x32xf32>
    %19 = tpu.matmul %17, %18, %cst_15 {dimension_numbers = #tpu.dot_dimension_numbers<[1], [0], [0], [1], [0, 0, 1, 1], [], []>} : vector<16x24xf32>, vector<24x32xf32>, vector<16x32xf32> -> vector<16x32xf32>
    %c0_16 = arith.constant 0 : index
    %c0_17 = arith.constant 0 : index
    %20 = vector.load %arg13[%c0_16, %c0_17] : memref<1x32xf32, #tpu.memory_space<vmem>>, vector<1x32xf32>
    %21 = vector.broadcast %20 : vector<1x32xf32> to vector<16x32xf32>
    %22 = arith.addf %19, %21 : vector<16x32xf32>
    %c0_18 = arith.constant 0 : index
    %c0_19 = arith.constant 0 : index
    %23 = vector.load %arg3[%c0_18, %c0_19] : memref<9x32xf32, #tpu.memory_space<vmem>>, vector<9x32xf32>
    %c0_20 = arith.constant 0 : index
    %c0_21 = arith.constant 0 : index
    %24 = vector.load %arg1[%c0_20, %c0_21] : memref<16x24xf32, #tpu.memory_space<vmem>>, vector<16x24xf32>
    %c0_22 = arith.constant 0 : index
    %c0_23 = arith.constant 0 : index
    %25 = vector.load %arg8[%c0_22, %c0_23] : memref<24x32xf32, #tpu.memory_space<vmem>>, vector<24x32xf32>
    %cst_24 = arith.constant dense<0.000000e+00> : vector<16x32xf32>
    %26 = tpu.matmul %24, %25, %cst_24 {dimension_numbers = #tpu.dot_dimension_numbers<[1], [0], [0], [1], [0, 0, 1, 1], [], []>} : vector<16x24xf32>, vector<24x32xf32>, vector<16x32xf32> -> vector<16x32xf32>
    %c0_25 = arith.constant 0 : index
    %c0_26 = arith.constant 0 : index
    %27 = vector.load %arg9[%c0_25, %c0_26] : memref<1x32xf32, #tpu.memory_space<vmem>>, vector<1x32xf32>
    %28 = vector.broadcast %27 : vector<1x32xf32> to vector<16x32xf32>
    %29 = arith.addf %26, %28 : vector<16x32xf32>
    %c0_27 = arith.constant 0 : index
    %c0_28 = arith.constant 0 : index
    %30 = vector.load %arg10[%c0_27, %c0_28] : memref<32x32xf32, #tpu.memory_space<vmem>>, vector<32x32xf32>
    %cst_29 = arith.constant dense<0.000000e+00> : vector<16x32xf32>
    %31 = tpu.matmul %29, %30, %cst_29 {dimension_numbers = #tpu.dot_dimension_numbers<[1], [0], [0], [1], [0, 0, 1, 1], [], []>} : vector<16x32xf32>, vector<32x32xf32>, vector<16x32xf32> -> vector<16x32xf32>
    %c0_30 = arith.constant 0 : index
    %c0_31 = arith.constant 0 : index
    %32 = vector.load %arg11[%c0_30, %c0_31] : memref<1x32xf32, #tpu.memory_space<vmem>>, vector<1x32xf32>
    %33 = vector.broadcast %32 : vector<1x32xf32> to vector<16x32xf32>
    %34 = arith.addf %31, %33 : vector<16x32xf32>
    %35 = vector.extract_strided_slice %34 {offsets = [0, 0], sizes = [8, 32], strides = [1, 1]} : vector<16x32xf32> to vector<8x32xf32>
    %36 = vector.extract_strided_slice %16 {offsets = [0, 0], sizes = [1, 32], strides = [1, 1]} : vector<2x32xf32> to vector<1x32xf32>
    %37 = tpu.concatenate %35, %36 in 0 : vector<8x32xf32>, vector<1x32xf32> -> vector<9x32xf32>
    %c0_32 = arith.constant 0 : index
    %c0_33 = arith.constant 0 : index
    %c0_34 = arith.constant 0 : index
    %38 = vector.load %arg15[%c0_32, %c0_33, %c0_34] : memref<2x9x32xf32, #tpu.memory_space<vmem>>, vector<1x9x32xf32>
    %39 = vector.shape_cast %38 : vector<1x9x32xf32> to vector<9x32xf32>
    %40 = vector.shape_cast %37 : vector<9x32xf32> to vector<1x9x32xf32>
    tpu.vector_store %arg15[%c0_32, %c0_33, %c0_34], %40 {strides = array<i32>} : memref<2x9x32xf32, #tpu.memory_space<vmem>>, vector<1x9x32xf32>,
    %cst_35 = arith.constant dense<0.000000e+00> : vector<32xf32>
    %41 = vector.multi_reduction <add>, %35, %cst_35 [0] : vector<8x32xf32> to vector<32xf32>
    %42 = vector.shape_cast %41 : vector<32xf32> to vector<1x32xf32>
    %cst_36 = arith.constant 8.000000e+00 : f32
    %43 = vector.broadcast %cst_36 : f32 to vector<1x32xf32>
    %44 = arith.divf %42, %43 : vector<1x32xf32>
    %45 = arith.addf %44, %36 : vector<1x32xf32>
    %46 = vector.extract_strided_slice %22 {offsets = [0, 0], sizes = [8, 32], strides = [1, 1]} : vector<16x32xf32> to vector<8x32xf32>
    %47 = tpu.concatenate %45, %46 in 0 : vector<1x32xf32>, vector<8x32xf32> -> vector<9x32xf32>
    %48 = arith.addf %47, %23 : vector<9x32xf32>
    %c0_37 = arith.constant 0 : index
    %c0_38 = arith.constant 0 : index
    %c0_39 = arith.constant 0 : index
    %49 = vector.load %arg14[%c0_37, %c0_38, %c0_39] : memref<2x9x32xf32, #tpu.memory_space<vmem>>, vector<1x9x32xf32>
    %50 = vector.shape_cast %49 : vector<1x9x32xf32> to vector<9x32xf32>
    %51 = vector.shape_cast %48 : vector<9x32xf32> to vector<1x9x32xf32>
    tpu.vector_store %arg14[%c0_37, %c0_38, %c0_39], %51 {strides = array<i32>} : memref<2x9x32xf32, #tpu.memory_space<vmem>>, vector<1x9x32xf32>,
    %52 = vector.extract_strided_slice %34 {offsets = [8, 0], sizes = [8, 32], strides = [1, 1]} : vector<16x32xf32> to vector<8x32xf32>
    %53 = vector.extract_strided_slice %16 {offsets = [1, 0], sizes = [1, 32], strides = [1, 1]} : vector<2x32xf32> to vector<1x32xf32>
    %54 = tpu.concatenate %52, %53 in 0 : vector<8x32xf32>, vector<1x32xf32> -> vector<9x32xf32>
    %c1 = arith.constant 1 : index
    %c0_40 = arith.constant 0 : index
    %c0_41 = arith.constant 0 : index
    %55 = vector.load %arg15[%c1, %c0_40, %c0_41] : memref<2x9x32xf32, #tpu.memory_space<vmem>>, vector<1x9x32xf32>
    %56 = vector.shape_cast %55 : vector<1x9x32xf32> to vector<9x32xf32>
    %57 = vector.shape_cast %54 : vector<9x32xf32> to vector<1x9x32xf32>
    tpu.vector_store %arg15[%c1, %c0_40, %c0_41], %57 {strides = array<i32>} : memref<2x9x32xf32, #tpu.memory_space<vmem>>, vector<1x9x32xf32>,
    %cst_42 = arith.constant dense<0.000000e+00> : vector<32xf32>
    %58 = vector.multi_reduction <add>, %52, %cst_42 [0] : vector<8x32xf32> to vector<32xf32>
    %59 = vector.shape_cast %58 : vector<32xf32> to vector<1x32xf32>
    %cst_43 = arith.constant 8.000000e+00 : f32
    %60 = vector.broadcast %cst_43 : f32 to vector<1x32xf32>
    %61 = arith.divf %59, %60 : vector<1x32xf32>
    %62 = arith.addf %61, %53 : vector<1x32xf32>
    %63 = vector.extract_strided_slice %22 {offsets = [8, 0], sizes = [8, 32], strides = [1, 1]} : vector<16x32xf32> to vector<8x32xf32>
    %64 = tpu.concatenate %62, %63 in 0 : vector<1x32xf32>, vector<8x32xf32> -> vector<9x32xf32>
    %65 = arith.addf %64, %23 : vector<9x32xf32>
    %c1_44 = arith.constant 1 : index
    %c0_45 = arith.constant 0 : index
    %c0_46 = arith.constant 0 : index
    %66 = vector.load %arg14[%c1_44, %c0_45, %c0_46] : memref<2x9x32xf32, #tpu.memory_space<vmem>>, vector<1x9x32xf32>
    %67 = vector.shape_cast %66 : vector<1x9x32xf32> to vector<9x32xf32>
    %68 = vector.shape_cast %65 : vector<9x32xf32> to vector<1x9x32xf32>
    tpu.vector_store %arg14[%c1_44, %c0_45, %c0_46], %68 {strides = array<i32>} : memref<2x9x32xf32, #tpu.memory_space<vmem>>, vector<1x9x32xf32>,
    return
  }
}

module attributes {stable_mosaic.version = 11 : i64} {
  func.func @_decoder_stack_kernel(%arg0: i32, %arg1: i32, %arg2: memref<1x9x32xf32, #tpu.memory_space<vmem>>, %arg3: memref<1x9x32xf32, #tpu.memory_space<vmem>>, %arg4: memref<1x32x96xf32, #tpu.memory_space<vmem>>, %arg5: memref<1x1x96xf32, #tpu.memory_space<vmem>>, %arg6: memref<1x32x32xf32, #tpu.memory_space<vmem>>, %arg7: memref<1x1x32xf32, #tpu.memory_space<vmem>>, %arg8: memref<1x1x32xf32, #tpu.memory_space<vmem>>, %arg9: memref<1x1x32xf32, #tpu.memory_space<vmem>>, %arg10: memref<1x32x32xf32, #tpu.memory_space<vmem>>, %arg11: memref<1x1x32xf32, #tpu.memory_space<vmem>>, %arg12: memref<1x32x64xf32, #tpu.memory_space<vmem>>, %arg13: memref<1x1x64xf32, #tpu.memory_space<vmem>>, %arg14: memref<1x32x32xf32, #tpu.memory_space<vmem>>, %arg15: memref<1x1x32xf32, #tpu.memory_space<vmem>>, %arg16: memref<1x1x32xf32, #tpu.memory_space<vmem>>, %arg17: memref<1x1x32xf32, #tpu.memory_space<vmem>>, %arg18: memref<1x32x64xf32, #tpu.memory_space<vmem>>, %arg19: memref<1x1x64xf32, #tpu.memory_space<vmem>>, %arg20: memref<1x64x32xf32, #tpu.memory_space<vmem>>, %arg21: memref<1x1x32xf32, #tpu.memory_space<vmem>>, %arg22: memref<1x1x32xf32, #tpu.memory_space<vmem>>, %arg23: memref<1x1x32xf32, #tpu.memory_space<vmem>>, %arg24: memref<1x9x32xf32, #tpu.memory_space<vmem>>, %arg25: memref<9x32xf32, #tpu.memory_space<vmem>>) attributes {dimension_semantics = [#tpu.dimension_semantics<parallel>, #tpu.dimension_semantics<arbitrary>], iteration_bounds = array<i64: 2, 2>, scalar_prefetch = 0 : i64, scratch_operands = 1 : i64, tpu.core_type = #tpu.core_type<tc>, window_params = [{transform_indices = @transform_0, window_bounds = array<i64: 1, 9, 32>}, {transform_indices = @transform_1, window_bounds = array<i64: 1, 9, 32>}, {transform_indices = @transform_2, window_bounds = array<i64: 1, 32, 96>}, {transform_indices = @transform_3, window_bounds = array<i64: 1, 1, 96>}, {transform_indices = @transform_4, window_bounds = array<i64: 1, 32, 32>}, {transform_indices = @transform_5, window_bounds = array<i64: 1, 1, 32>}, {transform_indices = @transform_6, window_bounds = array<i64: 1, 1, 32>}, {transform_indices = @transform_7, window_bounds = array<i64: 1, 1, 32>}, {transform_indices = @transform_8, window_bounds = array<i64: 1, 32, 32>}, {transform_indices = @transform_9, window_bounds = array<i64: 1, 1, 32>}, {transform_indices = @transform_10, window_bounds = array<i64: 1, 32, 64>}, {transform_indices = @transform_11, window_bounds = array<i64: 1, 1, 64>}, {transform_indices = @transform_12, window_bounds = array<i64: 1, 32, 32>}, {transform_indices = @transform_13, window_bounds = array<i64: 1, 1, 32>}, {transform_indices = @transform_14, window_bounds = array<i64: 1, 1, 32>}, {transform_indices = @transform_15, window_bounds = array<i64: 1, 1, 32>}, {transform_indices = @transform_16, window_bounds = array<i64: 1, 32, 64>}, {transform_indices = @transform_17, window_bounds = array<i64: 1, 1, 64>}, {transform_indices = @transform_18, window_bounds = array<i64: 1, 64, 32>}, {transform_indices = @transform_19, window_bounds = array<i64: 1, 1, 32>}, {transform_indices = @transform_20, window_bounds = array<i64: 1, 1, 32>}, {transform_indices = @transform_21, window_bounds = array<i64: 1, 1, 32>}, {transform_indices = @transform_22, window_bounds = array<i64: 1, 9, 32>}]} {
    %c0_i32 = arith.constant 0 : i32
    %0 = arith.cmpi eq, %arg1, %c0_i32 : i32
    %1 = arith.extui %0 : i1 to i32
    %c0_i32_0 = arith.constant 0 : i32
    %2 = arith.cmpi ne, %1, %c0_i32_0 : i32
    scf.if %2 {
      %c0_138 = arith.constant 0 : index
      %c0_139 = arith.constant 0 : index
      %c0_140 = arith.constant 0 : index
      %309 = vector.load %arg2[%c0_138, %c0_139, %c0_140] : memref<1x9x32xf32, #tpu.memory_space<vmem>>, vector<1x9x32xf32>
      %310 = vector.shape_cast %309 : vector<1x9x32xf32> to vector<9x32xf32>
      %c0_141 = arith.constant 0 : index
      %c0_142 = arith.constant 0 : index
      %311 = vector.load %arg25[%c0_141, %c0_142] : memref<9x32xf32, #tpu.memory_space<vmem>>, vector<9x32xf32>
      tpu.vector_store %arg25[%c0_141, %c0_142], %310 {strides = array<i32>} : memref<9x32xf32, #tpu.memory_space<vmem>>, vector<9x32xf32>,
    } else {
    }
    %c0 = arith.constant 0 : index
    %c0_1 = arith.constant 0 : index
    %3 = vector.load %arg25[%c0, %c0_1] : memref<9x32xf32, #tpu.memory_space<vmem>>, vector<9x32xf32>
    %c0_2 = arith.constant 0 : index
    %c0_3 = arith.constant 0 : index
    %c0_4 = arith.constant 0 : index
    %4 = vector.load %arg3[%c0_2, %c0_3, %c0_4] : memref<1x9x32xf32, #tpu.memory_space<vmem>>, vector<1x9x32xf32>
    %5 = vector.shape_cast %4 : vector<1x9x32xf32> to vector<9x32xf32>
    %c0_5 = arith.constant 0 : index
    %c0_6 = arith.constant 0 : index
    %c0_7 = arith.constant 0 : index
    %6 = vector.load %arg4[%c0_5, %c0_6, %c0_7] : memref<1x32x96xf32, #tpu.memory_space<vmem>>, vector<1x32x96xf32>
    %7 = vector.shape_cast %6 : vector<1x32x96xf32> to vector<32x96xf32>
    %cst = arith.constant dense<0.000000e+00> : vector<9x96xf32>
    %8 = tpu.matmul %3, %7, %cst {dimension_numbers = #tpu.dot_dimension_numbers<[1], [0], [0], [1], [0, 0, 1, 1], [], []>} : vector<9x32xf32>, vector<32x96xf32>, vector<9x96xf32> -> vector<9x96xf32>
    %c0_8 = arith.constant 0 : index
    %c0_9 = arith.constant 0 : index
    %c0_10 = arith.constant 0 : index
    %9 = vector.load %arg5[%c0_8, %c0_9, %c0_10] : memref<1x1x96xf32, #tpu.memory_space<vmem>>, vector<1x1x96xf32>
    %10 = vector.shape_cast %9 : vector<1x1x96xf32> to vector<1x96xf32>
    %11 = vector.broadcast %10 : vector<1x96xf32> to vector<9x96xf32>
    %12 = arith.addf %8, %11 : vector<9x96xf32>
    %13 = vector.extract_strided_slice %12 {offsets = [0, 0], sizes = [9, 32], strides = [1, 1]} : vector<9x96xf32> to vector<9x32xf32>
    %14 = vector.extract_strided_slice %12 {offsets = [0, 32], sizes = [9, 32], strides = [1, 1]} : vector<9x96xf32> to vector<9x32xf32>
    %15 = vector.extract_strided_slice %12 {offsets = [0, 64], sizes = [9, 32], strides = [1, 1]} : vector<9x96xf32> to vector<9x32xf32>
    %c0_11 = arith.constant 0 : index
    %c0_12 = arith.constant 0 : index
    %c0_13 = arith.constant 0 : index
    %16 = vector.load %arg6[%c0_11, %c0_12, %c0_13] : memref<1x32x32xf32, #tpu.memory_space<vmem>>, vector<1x32x32xf32>
    %17 = vector.shape_cast %16 : vector<1x32x32xf32> to vector<32x32xf32>
    %c0_14 = arith.constant 0 : index
    %c0_15 = arith.constant 0 : index
    %c0_16 = arith.constant 0 : index
    %18 = vector.load %arg7[%c0_14, %c0_15, %c0_16] : memref<1x1x32xf32, #tpu.memory_space<vmem>>, vector<1x1x32xf32>
    %19 = vector.shape_cast %18 : vector<1x1x32xf32> to vector<1x32xf32>
    %20 = vector.extract_strided_slice %13 {offsets = [0, 0], sizes = [9, 8], strides = [1, 1]} : vector<9x32xf32> to vector<9x8xf32>
    %21 = vector.extract_strided_slice %14 {offsets = [0, 0], sizes = [9, 8], strides = [1, 1]} : vector<9x32xf32> to vector<9x8xf32>
    %cst_17 = arith.constant dense<0.000000e+00> : vector<9x9xf32>
    %22 = tpu.matmul %20, %21, %cst_17 {dimension_numbers = #tpu.dot_dimension_numbers<[1], [1], [0], [0], [0, 0, 1, 0], [], []>} : vector<9x8xf32>, vector<9x8xf32>, vector<9x9xf32> -> vector<9x9xf32>
    %cst_18 = arith.constant 0.353553385 : f32
    %23 = vector.broadcast %cst_18 : f32 to vector<9x9xf32>
    %24 = arith.mulf %22, %23 : vector<9x9xf32>
    %cst_19 = arith.constant dense<0xFF800000> : vector<9xf32>
    %25 = vector.multi_reduction <maximumf>, %24, %cst_19 [1] : vector<9x9xf32> to vector<9xf32>
    %26 = vector.shape_cast %25 : vector<9xf32> to vector<9x1xf32>
    %27 = vector.broadcast %26 : vector<9x1xf32> to vector<9x9xf32>
    %28 = arith.subf %24, %27 : vector<9x9xf32>
    %29 = math.exp %28 : vector<9x9xf32>
    %cst_20 = arith.constant dense<0.000000e+00> : vector<9xf32>
    %30 = vector.multi_reduction <add>, %29, %cst_20 [1] : vector<9x9xf32> to vector<9xf32>
    %31 = vector.shape_cast %30 : vector<9xf32> to vector<9x1xf32>
    %32 = tpu.reciprocal %31 {approx = true} : vector<9x1xf32> -> vector<9x1xf32>
    %33 = vector.broadcast %32 : vector<9x1xf32> to vector<9x9xf32>
    %34 = arith.mulf %29, %33 : vector<9x9xf32>
    %35 = vector.extract_strided_slice %15 {offsets = [0, 0], sizes = [9, 8], strides = [1, 1]} : vector<9x32xf32> to vector<9x8xf32>
    %cst_21 = arith.constant dense<0.000000e+00> : vector<9x8xf32>
    %36 = tpu.matmul %34, %35, %cst_21 {dimension_numbers = #tpu.dot_dimension_numbers<[1], [0], [0], [1], [0, 0, 1, 1], [], []>} : vector<9x9xf32>, vector<9x8xf32>, vector<9x8xf32> -> vector<9x8xf32>
    %37 = vector.extract_strided_slice %17 {offsets = [0, 0], sizes = [8, 32], strides = [1, 1]} : vector<32x32xf32> to vector<8x32xf32>
    %cst_22 = arith.constant dense<0.000000e+00> : vector<9x32xf32>
    %38 = tpu.matmul %36, %37, %cst_22 {dimension_numbers = #tpu.dot_dimension_numbers<[1], [0], [0], [1], [0, 0, 1, 1], [], []>} : vector<9x8xf32>, vector<8x32xf32>, vector<9x32xf32> -> vector<9x32xf32>
    %39 = vector.extract_strided_slice %13 {offsets = [0, 8], sizes = [9, 8], strides = [1, 1]} : vector<9x32xf32> to vector<9x8xf32>
    %40 = vector.extract_strided_slice %14 {offsets = [0, 8], sizes = [9, 8], strides = [1, 1]} : vector<9x32xf32> to vector<9x8xf32>
    %cst_23 = arith.constant dense<0.000000e+00> : vector<9x9xf32>
    %41 = tpu.matmul %39, %40, %cst_23 {dimension_numbers = #tpu.dot_dimension_numbers<[1], [1], [0], [0], [0, 0, 1, 0], [], []>} : vector<9x8xf32>, vector<9x8xf32>, vector<9x9xf32> -> vector<9x9xf32>
    %cst_24 = arith.constant 0.353553385 : f32
    %42 = vector.broadcast %cst_24 : f32 to vector<9x9xf32>
    %43 = arith.mulf %41, %42 : vector<9x9xf32>
    %cst_25 = arith.constant dense<0xFF800000> : vector<9xf32>
    %44 = vector.multi_reduction <maximumf>, %43, %cst_25 [1] : vector<9x9xf32> to vector<9xf32>
    %45 = vector.shape_cast %44 : vector<9xf32> to vector<9x1xf32>
    %46 = vector.broadcast %45 : vector<9x1xf32> to vector<9x9xf32>
    %47 = arith.subf %43, %46 : vector<9x9xf32>
    %48 = math.exp %47 : vector<9x9xf32>
    %cst_26 = arith.constant dense<0.000000e+00> : vector<9xf32>
    %49 = vector.multi_reduction <add>, %48, %cst_26 [1] : vector<9x9xf32> to vector<9xf32>
    %50 = vector.shape_cast %49 : vector<9xf32> to vector<9x1xf32>
    %51 = tpu.reciprocal %50 {approx = true} : vector<9x1xf32> -> vector<9x1xf32>
    %52 = vector.broadcast %51 : vector<9x1xf32> to vector<9x9xf32>
    %53 = arith.mulf %48, %52 : vector<9x9xf32>
    %54 = vector.extract_strided_slice %15 {offsets = [0, 8], sizes = [9, 8], strides = [1, 1]} : vector<9x32xf32> to vector<9x8xf32>
    %cst_27 = arith.constant dense<0.000000e+00> : vector<9x8xf32>
    %55 = tpu.matmul %53, %54, %cst_27 {dimension_numbers = #tpu.dot_dimension_numbers<[1], [0], [0], [1], [0, 0, 1, 1], [], []>} : vector<9x9xf32>, vector<9x8xf32>, vector<9x8xf32> -> vector<9x8xf32>
    %56 = vector.extract_strided_slice %17 {offsets = [8, 0], sizes = [8, 32], strides = [1, 1]} : vector<32x32xf32> to vector<8x32xf32>
    %cst_28 = arith.constant dense<0.000000e+00> : vector<9x32xf32>
    %57 = tpu.matmul %55, %56, %cst_28 {dimension_numbers = #tpu.dot_dimension_numbers<[1], [0], [0], [1], [0, 0, 1, 1], [], []>} : vector<9x8xf32>, vector<8x32xf32>, vector<9x32xf32> -> vector<9x32xf32>
    %58 = arith.addf %38, %57 : vector<9x32xf32>
    %59 = vector.extract_strided_slice %13 {offsets = [0, 16], sizes = [9, 8], strides = [1, 1]} : vector<9x32xf32> to vector<9x8xf32>
    %60 = vector.extract_strided_slice %14 {offsets = [0, 16], sizes = [9, 8], strides = [1, 1]} : vector<9x32xf32> to vector<9x8xf32>
    %cst_29 = arith.constant dense<0.000000e+00> : vector<9x9xf32>
    %61 = tpu.matmul %59, %60, %cst_29 {dimension_numbers = #tpu.dot_dimension_numbers<[1], [1], [0], [0], [0, 0, 1, 0], [], []>} : vector<9x8xf32>, vector<9x8xf32>, vector<9x9xf32> -> vector<9x9xf32>
    %cst_30 = arith.constant 0.353553385 : f32
    %62 = vector.broadcast %cst_30 : f32 to vector<9x9xf32>
    %63 = arith.mulf %61, %62 : vector<9x9xf32>
    %cst_31 = arith.constant dense<0xFF800000> : vector<9xf32>
    %64 = vector.multi_reduction <maximumf>, %63, %cst_31 [1] : vector<9x9xf32> to vector<9xf32>
    %65 = vector.shape_cast %64 : vector<9xf32> to vector<9x1xf32>
    %66 = vector.broadcast %65 : vector<9x1xf32> to vector<9x9xf32>
    %67 = arith.subf %63, %66 : vector<9x9xf32>
    %68 = math.exp %67 : vector<9x9xf32>
    %cst_32 = arith.constant dense<0.000000e+00> : vector<9xf32>
    %69 = vector.multi_reduction <add>, %68, %cst_32 [1] : vector<9x9xf32> to vector<9xf32>
    %70 = vector.shape_cast %69 : vector<9xf32> to vector<9x1xf32>
    %71 = tpu.reciprocal %70 {approx = true} : vector<9x1xf32> -> vector<9x1xf32>
    %72 = vector.broadcast %71 : vector<9x1xf32> to vector<9x9xf32>
    %73 = arith.mulf %68, %72 : vector<9x9xf32>
    %74 = vector.extract_strided_slice %15 {offsets = [0, 16], sizes = [9, 8], strides = [1, 1]} : vector<9x32xf32> to vector<9x8xf32>
    %cst_33 = arith.constant dense<0.000000e+00> : vector<9x8xf32>
    %75 = tpu.matmul %73, %74, %cst_33 {dimension_numbers = #tpu.dot_dimension_numbers<[1], [0], [0], [1], [0, 0, 1, 1], [], []>} : vector<9x9xf32>, vector<9x8xf32>, vector<9x8xf32> -> vector<9x8xf32>
    %76 = vector.extract_strided_slice %17 {offsets = [16, 0], sizes = [8, 32], strides = [1, 1]} : vector<32x32xf32> to vector<8x32xf32>
    %cst_34 = arith.constant dense<0.000000e+00> : vector<9x32xf32>
    %77 = tpu.matmul %75, %76, %cst_34 {dimension_numbers = #tpu.dot_dimension_numbers<[1], [0], [0], [1], [0, 0, 1, 1], [], []>} : vector<9x8xf32>, vector<8x32xf32>, vector<9x32xf32> -> vector<9x32xf32>
    %78 = arith.addf %58, %77 : vector<9x32xf32>
    %79 = vector.extract_strided_slice %13 {offsets = [0, 24], sizes = [9, 8], strides = [1, 1]} : vector<9x32xf32> to vector<9x8xf32>
    %80 = vector.extract_strided_slice %14 {offsets = [0, 24], sizes = [9, 8], strides = [1, 1]} : vector<9x32xf32> to vector<9x8xf32>
    %cst_35 = arith.constant dense<0.000000e+00> : vector<9x9xf32>
    %81 = tpu.matmul %79, %80, %cst_35 {dimension_numbers = #tpu.dot_dimension_numbers<[1], [1], [0], [0], [0, 0, 1, 0], [], []>} : vector<9x8xf32>, vector<9x8xf32>, vector<9x9xf32> -> vector<9x9xf32>
    %cst_36 = arith.constant 0.353553385 : f32
    %82 = vector.broadcast %cst_36 : f32 to vector<9x9xf32>
    %83 = arith.mulf %81, %82 : vector<9x9xf32>
    %cst_37 = arith.constant dense<0xFF800000> : vector<9xf32>
    %84 = vector.multi_reduction <maximumf>, %83, %cst_37 [1] : vector<9x9xf32> to vector<9xf32>
    %85 = vector.shape_cast %84 : vector<9xf32> to vector<9x1xf32>
    %86 = vector.broadcast %85 : vector<9x1xf32> to vector<9x9xf32>
    %87 = arith.subf %83, %86 : vector<9x9xf32>
    %88 = math.exp %87 : vector<9x9xf32>
    %cst_38 = arith.constant dense<0.000000e+00> : vector<9xf32>
    %89 = vector.multi_reduction <add>, %88, %cst_38 [1] : vector<9x9xf32> to vector<9xf32>
    %90 = vector.shape_cast %89 : vector<9xf32> to vector<9x1xf32>
    %91 = tpu.reciprocal %90 {approx = true} : vector<9x1xf32> -> vector<9x1xf32>
    %92 = vector.broadcast %91 : vector<9x1xf32> to vector<9x9xf32>
    %93 = arith.mulf %88, %92 : vector<9x9xf32>
    %94 = vector.extract_strided_slice %15 {offsets = [0, 24], sizes = [9, 8], strides = [1, 1]} : vector<9x32xf32> to vector<9x8xf32>
    %cst_39 = arith.constant dense<0.000000e+00> : vector<9x8xf32>
    %95 = tpu.matmul %93, %94, %cst_39 {dimension_numbers = #tpu.dot_dimension_numbers<[1], [0], [0], [1], [0, 0, 1, 1], [], []>} : vector<9x9xf32>, vector<9x8xf32>, vector<9x8xf32> -> vector<9x8xf32>
    %96 = vector.extract_strided_slice %17 {offsets = [24, 0], sizes = [8, 32], strides = [1, 1]} : vector<32x32xf32> to vector<8x32xf32>
    %cst_40 = arith.constant dense<0.000000e+00> : vector<9x32xf32>
    %97 = tpu.matmul %95, %96, %cst_40 {dimension_numbers = #tpu.dot_dimension_numbers<[1], [0], [0], [1], [0, 0, 1, 1], [], []>} : vector<9x8xf32>, vector<8x32xf32>, vector<9x32xf32> -> vector<9x32xf32>
    %98 = arith.addf %78, %97 : vector<9x32xf32>
    %99 = vector.broadcast %19 : vector<1x32xf32> to vector<9x32xf32>
    %100 = arith.addf %98, %99 : vector<9x32xf32>
    %101 = arith.addf %3, %100 : vector<9x32xf32>
    %c0_41 = arith.constant 0 : index
    %c0_42 = arith.constant 0 : index
    %c0_43 = arith.constant 0 : index
    %102 = vector.load %arg8[%c0_41, %c0_42, %c0_43] : memref<1x1x32xf32, #tpu.memory_space<vmem>>, vector<1x1x32xf32>
    %103 = vector.shape_cast %102 : vector<1x1x32xf32> to vector<1x32xf32>
    %c0_44 = arith.constant 0 : index
    %c0_45 = arith.constant 0 : index
    %c0_46 = arith.constant 0 : index
    %104 = vector.load %arg9[%c0_44, %c0_45, %c0_46] : memref<1x1x32xf32, #tpu.memory_space<vmem>>, vector<1x1x32xf32>
    %105 = vector.shape_cast %104 : vector<1x1x32xf32> to vector<1x32xf32>
    %cst_47 = arith.constant dense<0.000000e+00> : vector<9xf32>
    %106 = vector.multi_reduction <add>, %101, %cst_47 [1] : vector<9x32xf32> to vector<9xf32>
    %107 = vector.shape_cast %106 : vector<9xf32> to vector<9x1xf32>
    %cst_48 = arith.constant 3.200000e+01 : f32
    %108 = vector.broadcast %cst_48 : f32 to vector<9x1xf32>
    %109 = arith.divf %107, %108 : vector<9x1xf32>
    %110 = vector.broadcast %109 : vector<9x1xf32> to vector<9x32xf32>
    %111 = arith.subf %101, %110 : vector<9x32xf32>
    %112 = arith.mulf %111, %111 : vector<9x32xf32>
    %cst_49 = arith.constant dense<0.000000e+00> : vector<9xf32>
    %113 = vector.multi_reduction <add>, %112, %cst_49 [1] : vector<9x32xf32> to vector<9xf32>
    %114 = vector.shape_cast %113 : vector<9xf32> to vector<9x1xf32>
    %cst_50 = arith.constant 3.200000e+01 : f32
    %115 = vector.broadcast %cst_50 : f32 to vector<9x1xf32>
    %116 = arith.divf %114, %115 : vector<9x1xf32>
    %117 = vector.broadcast %109 : vector<9x1xf32> to vector<9x32xf32>
    %118 = arith.subf %101, %117 : vector<9x32xf32>
    %cst_51 = arith.constant 9.99999974E-6 : f32
    %119 = vector.broadcast %cst_51 : f32 to vector<9x1xf32>
    %120 = arith.addf %116, %119 : vector<9x1xf32>
    %121 = math.rsqrt %120 : vector<9x1xf32>
    %122 = vector.broadcast %121 : vector<9x1xf32> to vector<9x32xf32>
    %123 = arith.mulf %118, %122 : vector<9x32xf32>
    %124 = vector.broadcast %103 : vector<1x32xf32> to vector<9x32xf32>
    %125 = arith.mulf %123, %124 : vector<9x32xf32>
    %126 = vector.broadcast %105 : vector<1x32xf32> to vector<9x32xf32>
    %127 = arith.addf %125, %126 : vector<9x32xf32>
    %c0_52 = arith.constant 0 : index
    %c0_53 = arith.constant 0 : index
    %c0_54 = arith.constant 0 : index
    %128 = vector.load %arg10[%c0_52, %c0_53, %c0_54] : memref<1x32x32xf32, #tpu.memory_space<vmem>>, vector<1x32x32xf32>
    %129 = vector.shape_cast %128 : vector<1x32x32xf32> to vector<32x32xf32>
    %cst_55 = arith.constant dense<0.000000e+00> : vector<9x32xf32>
    %130 = tpu.matmul %127, %129, %cst_55 {dimension_numbers = #tpu.dot_dimension_numbers<[1], [0], [0], [1], [0, 0, 1, 1], [], []>} : vector<9x32xf32>, vector<32x32xf32>, vector<9x32xf32> -> vector<9x32xf32>
    %c0_56 = arith.constant 0 : index
    %c0_57 = arith.constant 0 : index
    %c0_58 = arith.constant 0 : index
    %131 = vector.load %arg11[%c0_56, %c0_57, %c0_58] : memref<1x1x32xf32, #tpu.memory_space<vmem>>, vector<1x1x32xf32>
    %132 = vector.shape_cast %131 : vector<1x1x32xf32> to vector<1x32xf32>
    %133 = vector.broadcast %132 : vector<1x32xf32> to vector<9x32xf32>
    %134 = arith.addf %130, %133 : vector<9x32xf32>
    %c0_59 = arith.constant 0 : index
    %c0_60 = arith.constant 0 : index
    %c0_61 = arith.constant 0 : index
    %135 = vector.load %arg12[%c0_59, %c0_60, %c0_61] : memref<1x32x64xf32, #tpu.memory_space<vmem>>, vector<1x32x64xf32>
    %136 = vector.shape_cast %135 : vector<1x32x64xf32> to vector<32x64xf32>
    %cst_62 = arith.constant dense<0.000000e+00> : vector<9x64xf32>
    %137 = tpu.matmul %5, %136, %cst_62 {dimension_numbers = #tpu.dot_dimension_numbers<[1], [0], [0], [1], [0, 0, 1, 1], [], []>} : vector<9x32xf32>, vector<32x64xf32>, vector<9x64xf32> -> vector<9x64xf32>
    %c0_63 = arith.constant 0 : index
    %c0_64 = arith.constant 0 : index
    %c0_65 = arith.constant 0 : index
    %138 = vector.load %arg13[%c0_63, %c0_64, %c0_65] : memref<1x1x64xf32, #tpu.memory_space<vmem>>, vector<1x1x64xf32>
    %139 = vector.shape_cast %138 : vector<1x1x64xf32> to vector<1x64xf32>
    %140 = vector.broadcast %139 : vector<1x64xf32> to vector<9x64xf32>
    %141 = arith.addf %137, %140 : vector<9x64xf32>
    %142 = vector.extract_strided_slice %141 {offsets = [0, 0], sizes = [9, 32], strides = [1, 1]} : vector<9x64xf32> to vector<9x32xf32>
    %143 = vector.extract_strided_slice %141 {offsets = [0, 32], sizes = [9, 32], strides = [1, 1]} : vector<9x64xf32> to vector<9x32xf32>
    %c0_66 = arith.constant 0 : index
    %c0_67 = arith.constant 0 : index
    %c0_68 = arith.constant 0 : index
    %144 = vector.load %arg14[%c0_66, %c0_67, %c0_68] : memref<1x32x32xf32, #tpu.memory_space<vmem>>, vector<1x32x32xf32>
    %145 = vector.shape_cast %144 : vector<1x32x32xf32> to vector<32x32xf32>
    %c0_69 = arith.constant 0 : index
    %c0_70 = arith.constant 0 : index
    %c0_71 = arith.constant 0 : index
    %146 = vector.load %arg15[%c0_69, %c0_70, %c0_71] : memref<1x1x32xf32, #tpu.memory_space<vmem>>, vector<1x1x32xf32>
    %147 = vector.shape_cast %146 : vector<1x1x32xf32> to vector<1x32xf32>
    %148 = vector.extract_strided_slice %134 {offsets = [0, 0], sizes = [9, 8], strides = [1, 1]} : vector<9x32xf32> to vector<9x8xf32>
    %149 = vector.extract_strided_slice %142 {offsets = [0, 0], sizes = [9, 8], strides = [1, 1]} : vector<9x32xf32> to vector<9x8xf32>
    %cst_72 = arith.constant dense<0.000000e+00> : vector<9x9xf32>
    %150 = tpu.matmul %148, %149, %cst_72 {dimension_numbers = #tpu.dot_dimension_numbers<[1], [1], [0], [0], [0, 0, 1, 0], [], []>} : vector<9x8xf32>, vector<9x8xf32>, vector<9x9xf32> -> vector<9x9xf32>
    %cst_73 = arith.constant 0.353553385 : f32
    %151 = vector.broadcast %cst_73 : f32 to vector<9x9xf32>
    %152 = arith.mulf %150, %151 : vector<9x9xf32>
    %cst_74 = arith.constant dense<0xFF800000> : vector<9xf32>
    %153 = vector.multi_reduction <maximumf>, %152, %cst_74 [1] : vector<9x9xf32> to vector<9xf32>
    %154 = vector.shape_cast %153 : vector<9xf32> to vector<9x1xf32>
    %155 = vector.broadcast %154 : vector<9x1xf32> to vector<9x9xf32>
    %156 = arith.subf %152, %155 : vector<9x9xf32>
    %157 = math.exp %156 : vector<9x9xf32>
    %cst_75 = arith.constant dense<0.000000e+00> : vector<9xf32>
    %158 = vector.multi_reduction <add>, %157, %cst_75 [1] : vector<9x9xf32> to vector<9xf32>
    %159 = vector.shape_cast %158 : vector<9xf32> to vector<9x1xf32>
    %160 = tpu.reciprocal %159 {approx = true} : vector<9x1xf32> -> vector<9x1xf32>
    %161 = vector.broadcast %160 : vector<9x1xf32> to vector<9x9xf32>
    %162 = arith.mulf %157, %161 : vector<9x9xf32>
    %163 = vector.extract_strided_slice %143 {offsets = [0, 0], sizes = [9, 8], strides = [1, 1]} : vector<9x32xf32> to vector<9x8xf32>
    %cst_76 = arith.constant dense<0.000000e+00> : vector<9x8xf32>
    %164 = tpu.matmul %162, %163, %cst_76 {dimension_numbers = #tpu.dot_dimension_numbers<[1], [0], [0], [1], [0, 0, 1, 1], [], []>} : vector<9x9xf32>, vector<9x8xf32>, vector<9x8xf32> -> vector<9x8xf32>
    %165 = vector.extract_strided_slice %145 {offsets = [0, 0], sizes = [8, 32], strides = [1, 1]} : vector<32x32xf32> to vector<8x32xf32>
    %cst_77 = arith.constant dense<0.000000e+00> : vector<9x32xf32>
    %166 = tpu.matmul %164, %165, %cst_77 {dimension_numbers = #tpu.dot_dimension_numbers<[1], [0], [0], [1], [0, 0, 1, 1], [], []>} : vector<9x8xf32>, vector<8x32xf32>, vector<9x32xf32> -> vector<9x32xf32>
    %167 = vector.extract_strided_slice %134 {offsets = [0, 8], sizes = [9, 8], strides = [1, 1]} : vector<9x32xf32> to vector<9x8xf32>
    %168 = vector.extract_strided_slice %142 {offsets = [0, 8], sizes = [9, 8], strides = [1, 1]} : vector<9x32xf32> to vector<9x8xf32>
    %cst_78 = arith.constant dense<0.000000e+00> : vector<9x9xf32>
    %169 = tpu.matmul %167, %168, %cst_78 {dimension_numbers = #tpu.dot_dimension_numbers<[1], [1], [0], [0], [0, 0, 1, 0], [], []>} : vector<9x8xf32>, vector<9x8xf32>, vector<9x9xf32> -> vector<9x9xf32>
    %cst_79 = arith.constant 0.353553385 : f32
    %170 = vector.broadcast %cst_79 : f32 to vector<9x9xf32>
    %171 = arith.mulf %169, %170 : vector<9x9xf32>
    %cst_80 = arith.constant dense<0xFF800000> : vector<9xf32>
    %172 = vector.multi_reduction <maximumf>, %171, %cst_80 [1] : vector<9x9xf32> to vector<9xf32>
    %173 = vector.shape_cast %172 : vector<9xf32> to vector<9x1xf32>
    %174 = vector.broadcast %173 : vector<9x1xf32> to vector<9x9xf32>
    %175 = arith.subf %171, %174 : vector<9x9xf32>
    %176 = math.exp %175 : vector<9x9xf32>
    %cst_81 = arith.constant dense<0.000000e+00> : vector<9xf32>
    %177 = vector.multi_reduction <add>, %176, %cst_81 [1] : vector<9x9xf32> to vector<9xf32>
    %178 = vector.shape_cast %177 : vector<9xf32> to vector<9x1xf32>
    %179 = tpu.reciprocal %178 {approx = true} : vector<9x1xf32> -> vector<9x1xf32>
    %180 = vector.broadcast %179 : vector<9x1xf32> to vector<9x9xf32>
    %181 = arith.mulf %176, %180 : vector<9x9xf32>
    %182 = vector.extract_strided_slice %143 {offsets = [0, 8], sizes = [9, 8], strides = [1, 1]} : vector<9x32xf32> to vector<9x8xf32>
    %cst_82 = arith.constant dense<0.000000e+00> : vector<9x8xf32>
    %183 = tpu.matmul %181, %182, %cst_82 {dimension_numbers = #tpu.dot_dimension_numbers<[1], [0], [0], [1], [0, 0, 1, 1], [], []>} : vector<9x9xf32>, vector<9x8xf32>, vector<9x8xf32> -> vector<9x8xf32>
    %184 = vector.extract_strided_slice %145 {offsets = [8, 0], sizes = [8, 32], strides = [1, 1]} : vector<32x32xf32> to vector<8x32xf32>
    %cst_83 = arith.constant dense<0.000000e+00> : vector<9x32xf32>
    %185 = tpu.matmul %183, %184, %cst_83 {dimension_numbers = #tpu.dot_dimension_numbers<[1], [0], [0], [1], [0, 0, 1, 1], [], []>} : vector<9x8xf32>, vector<8x32xf32>, vector<9x32xf32> -> vector<9x32xf32>
    %186 = arith.addf %166, %185 : vector<9x32xf32>
    %187 = vector.extract_strided_slice %134 {offsets = [0, 16], sizes = [9, 8], strides = [1, 1]} : vector<9x32xf32> to vector<9x8xf32>
    %188 = vector.extract_strided_slice %142 {offsets = [0, 16], sizes = [9, 8], strides = [1, 1]} : vector<9x32xf32> to vector<9x8xf32>
    %cst_84 = arith.constant dense<0.000000e+00> : vector<9x9xf32>
    %189 = tpu.matmul %187, %188, %cst_84 {dimension_numbers = #tpu.dot_dimension_numbers<[1], [1], [0], [0], [0, 0, 1, 0], [], []>} : vector<9x8xf32>, vector<9x8xf32>, vector<9x9xf32> -> vector<9x9xf32>
    %cst_85 = arith.constant 0.353553385 : f32
    %190 = vector.broadcast %cst_85 : f32 to vector<9x9xf32>
    %191 = arith.mulf %189, %190 : vector<9x9xf32>
    %cst_86 = arith.constant dense<0xFF800000> : vector<9xf32>
    %192 = vector.multi_reduction <maximumf>, %191, %cst_86 [1] : vector<9x9xf32> to vector<9xf32>
    %193 = vector.shape_cast %192 : vector<9xf32> to vector<9x1xf32>
    %194 = vector.broadcast %193 : vector<9x1xf32> to vector<9x9xf32>
    %195 = arith.subf %191, %194 : vector<9x9xf32>
    %196 = math.exp %195 : vector<9x9xf32>
    %cst_87 = arith.constant dense<0.000000e+00> : vector<9xf32>
    %197 = vector.multi_reduction <add>, %196, %cst_87 [1] : vector<9x9xf32> to vector<9xf32>
    %198 = vector.shape_cast %197 : vector<9xf32> to vector<9x1xf32>
    %199 = tpu.reciprocal %198 {approx = true} : vector<9x1xf32> -> vector<9x1xf32>
    %200 = vector.broadcast %199 : vector<9x1xf32> to vector<9x9xf32>
    %201 = arith.mulf %196, %200 : vector<9x9xf32>
    %202 = vector.extract_strided_slice %143 {offsets = [0, 16], sizes = [9, 8], strides = [1, 1]} : vector<9x32xf32> to vector<9x8xf32>
    %cst_88 = arith.constant dense<0.000000e+00> : vector<9x8xf32>
    %203 = tpu.matmul %201, %202, %cst_88 {dimension_numbers = #tpu.dot_dimension_numbers<[1], [0], [0], [1], [0, 0, 1, 1], [], []>} : vector<9x9xf32>, vector<9x8xf32>, vector<9x8xf32> -> vector<9x8xf32>
    %204 = vector.extract_strided_slice %145 {offsets = [16, 0], sizes = [8, 32], strides = [1, 1]} : vector<32x32xf32> to vector<8x32xf32>
    %cst_89 = arith.constant dense<0.000000e+00> : vector<9x32xf32>
    %205 = tpu.matmul %203, %204, %cst_89 {dimension_numbers = #tpu.dot_dimension_numbers<[1], [0], [0], [1], [0, 0, 1, 1], [], []>} : vector<9x8xf32>, vector<8x32xf32>, vector<9x32xf32> -> vector<9x32xf32>
    %206 = arith.addf %186, %205 : vector<9x32xf32>
    %207 = vector.extract_strided_slice %134 {offsets = [0, 24], sizes = [9, 8], strides = [1, 1]} : vector<9x32xf32> to vector<9x8xf32>
    %208 = vector.extract_strided_slice %142 {offsets = [0, 24], sizes = [9, 8], strides = [1, 1]} : vector<9x32xf32> to vector<9x8xf32>
    %cst_90 = arith.constant dense<0.000000e+00> : vector<9x9xf32>
    %209 = tpu.matmul %207, %208, %cst_90 {dimension_numbers = #tpu.dot_dimension_numbers<[1], [1], [0], [0], [0, 0, 1, 0], [], []>} : vector<9x8xf32>, vector<9x8xf32>, vector<9x9xf32> -> vector<9x9xf32>
    %cst_91 = arith.constant 0.353553385 : f32
    %210 = vector.broadcast %cst_91 : f32 to vector<9x9xf32>
    %211 = arith.mulf %209, %210 : vector<9x9xf32>
    %cst_92 = arith.constant dense<0xFF800000> : vector<9xf32>
    %212 = vector.multi_reduction <maximumf>, %211, %cst_92 [1] : vector<9x9xf32> to vector<9xf32>
    %213 = vector.shape_cast %212 : vector<9xf32> to vector<9x1xf32>
    %214 = vector.broadcast %213 : vector<9x1xf32> to vector<9x9xf32>
    %215 = arith.subf %211, %214 : vector<9x9xf32>
    %216 = math.exp %215 : vector<9x9xf32>
    %cst_93 = arith.constant dense<0.000000e+00> : vector<9xf32>
    %217 = vector.multi_reduction <add>, %216, %cst_93 [1] : vector<9x9xf32> to vector<9xf32>
    %218 = vector.shape_cast %217 : vector<9xf32> to vector<9x1xf32>
    %219 = tpu.reciprocal %218 {approx = true} : vector<9x1xf32> -> vector<9x1xf32>
    %220 = vector.broadcast %219 : vector<9x1xf32> to vector<9x9xf32>
    %221 = arith.mulf %216, %220 : vector<9x9xf32>
    %222 = vector.extract_strided_slice %143 {offsets = [0, 24], sizes = [9, 8], strides = [1, 1]} : vector<9x32xf32> to vector<9x8xf32>
    %cst_94 = arith.constant dense<0.000000e+00> : vector<9x8xf32>
    %223 = tpu.matmul %221, %222, %cst_94 {dimension_numbers = #tpu.dot_dimension_numbers<[1], [0], [0], [1], [0, 0, 1, 1], [], []>} : vector<9x9xf32>, vector<9x8xf32>, vector<9x8xf32> -> vector<9x8xf32>
    %224 = vector.extract_strided_slice %145 {offsets = [24, 0], sizes = [8, 32], strides = [1, 1]} : vector<32x32xf32> to vector<8x32xf32>
    %cst_95 = arith.constant dense<0.000000e+00> : vector<9x32xf32>
    %225 = tpu.matmul %223, %224, %cst_95 {dimension_numbers = #tpu.dot_dimension_numbers<[1], [0], [0], [1], [0, 0, 1, 1], [], []>} : vector<9x8xf32>, vector<8x32xf32>, vector<9x32xf32> -> vector<9x32xf32>
    %226 = arith.addf %206, %225 : vector<9x32xf32>
    %227 = vector.broadcast %147 : vector<1x32xf32> to vector<9x32xf32>
    %228 = arith.addf %226, %227 : vector<9x32xf32>
    %229 = arith.addf %127, %228 : vector<9x32xf32>
    %c0_96 = arith.constant 0 : index
    %c0_97 = arith.constant 0 : index
    %c0_98 = arith.constant 0 : index
    %230 = vector.load %arg16[%c0_96, %c0_97, %c0_98] : memref<1x1x32xf32, #tpu.memory_space<vmem>>, vector<1x1x32xf32>
    %231 = vector.shape_cast %230 : vector<1x1x32xf32> to vector<1x32xf32>
    %c0_99 = arith.constant 0 : index
    %c0_100 = arith.constant 0 : index
    %c0_101 = arith.constant 0 : index
    %232 = vector.load %arg17[%c0_99, %c0_100, %c0_101] : memref<1x1x32xf32, #tpu.memory_space<vmem>>, vector<1x1x32xf32>
    %233 = vector.shape_cast %232 : vector<1x1x32xf32> to vector<1x32xf32>
    %cst_102 = arith.constant dense<0.000000e+00> : vector<9xf32>
    %234 = vector.multi_reduction <add>, %229, %cst_102 [1] : vector<9x32xf32> to vector<9xf32>
    %235 = vector.shape_cast %234 : vector<9xf32> to vector<9x1xf32>
    %cst_103 = arith.constant 3.200000e+01 : f32
    %236 = vector.broadcast %cst_103 : f32 to vector<9x1xf32>
    %237 = arith.divf %235, %236 : vector<9x1xf32>
    %238 = vector.broadcast %237 : vector<9x1xf32> to vector<9x32xf32>
    %239 = arith.subf %229, %238 : vector<9x32xf32>
    %240 = arith.mulf %239, %239 : vector<9x32xf32>
    %cst_104 = arith.constant dense<0.000000e+00> : vector<9xf32>
    %241 = vector.multi_reduction <add>, %240, %cst_104 [1] : vector<9x32xf32> to vector<9xf32>
    %242 = vector.shape_cast %241 : vector<9xf32> to vector<9x1xf32>
    %cst_105 = arith.constant 3.200000e+01 : f32
    %243 = vector.broadcast %cst_105 : f32 to vector<9x1xf32>
    %244 = arith.divf %242, %243 : vector<9x1xf32>
    %245 = vector.broadcast %237 : vector<9x1xf32> to vector<9x32xf32>
    %246 = arith.subf %229, %245 : vector<9x32xf32>
    %cst_106 = arith.constant 9.99999974E-6 : f32
    %247 = vector.broadcast %cst_106 : f32 to vector<9x1xf32>
    %248 = arith.addf %244, %247 : vector<9x1xf32>
    %249 = math.rsqrt %248 : vector<9x1xf32>
    %250 = vector.broadcast %249 : vector<9x1xf32> to vector<9x32xf32>
    %251 = arith.mulf %246, %250 : vector<9x32xf32>
    %252 = vector.broadcast %231 : vector<1x32xf32> to vector<9x32xf32>
    %253 = arith.mulf %251, %252 : vector<9x32xf32>
    %254 = vector.broadcast %233 : vector<1x32xf32> to vector<9x32xf32>
    %255 = arith.addf %253, %254 : vector<9x32xf32>
    %c0_107 = arith.constant 0 : index
    %c0_108 = arith.constant 0 : index
    %c0_109 = arith.constant 0 : index
    %256 = vector.load %arg18[%c0_107, %c0_108, %c0_109] : memref<1x32x64xf32, #tpu.memory_space<vmem>>, vector<1x32x64xf32>
    %257 = vector.shape_cast %256 : vector<1x32x64xf32> to vector<32x64xf32>
    %cst_110 = arith.constant dense<0.000000e+00> : vector<9x64xf32>
    %258 = tpu.matmul %255, %257, %cst_110 {dimension_numbers = #tpu.dot_dimension_numbers<[1], [0], [0], [1], [0, 0, 1, 1], [], []>} : vector<9x32xf32>, vector<32x64xf32>, vector<9x64xf32> -> vector<9x64xf32>
    %c0_111 = arith.constant 0 : index
    %c0_112 = arith.constant 0 : index
    %c0_113 = arith.constant 0 : index
    %259 = vector.load %arg19[%c0_111, %c0_112, %c0_113] : memref<1x1x64xf32, #tpu.memory_space<vmem>>, vector<1x1x64xf32>
    %260 = vector.shape_cast %259 : vector<1x1x64xf32> to vector<1x64xf32>
    %261 = vector.broadcast %260 : vector<1x64xf32> to vector<9x64xf32>
    %262 = arith.addf %258, %261 : vector<9x64xf32>
    %cst_114 = arith.constant 5.000000e-01 : f32
    %263 = vector.broadcast %cst_114 : f32 to vector<9x64xf32>
    %264 = arith.mulf %263, %262 : vector<9x64xf32>
    %cst_115 = arith.constant 0.707106769 : f32
    %265 = vector.broadcast %cst_115 : f32 to vector<9x64xf32>
    %266 = arith.mulf %262, %265 : vector<9x64xf32>
    %267 = math.erf %266 : vector<9x64xf32>
    %cst_116 = arith.constant 1.000000e+00 : f32
    %268 = vector.broadcast %cst_116 : f32 to vector<9x64xf32>
    %269 = arith.addf %268, %267 : vector<9x64xf32>
    %270 = arith.mulf %264, %269 : vector<9x64xf32>
    %c0_117 = arith.constant 0 : index
    %c0_118 = arith.constant 0 : index
    %c0_119 = arith.constant 0 : index
    %271 = vector.load %arg20[%c0_117, %c0_118, %c0_119] : memref<1x64x32xf32, #tpu.memory_space<vmem>>, vector<1x64x32xf32>
    %272 = vector.shape_cast %271 : vector<1x64x32xf32> to vector<64x32xf32>
    %cst_120 = arith.constant dense<0.000000e+00> : vector<9x32xf32>
    %273 = tpu.matmul %270, %272, %cst_120 {dimension_numbers = #tpu.dot_dimension_numbers<[1], [0], [0], [1], [0, 0, 1, 1], [], []>} : vector<9x64xf32>, vector<64x32xf32>, vector<9x32xf32> -> vector<9x32xf32>
    %c0_121 = arith.constant 0 : index
    %c0_122 = arith.constant 0 : index
    %c0_123 = arith.constant 0 : index
    %274 = vector.load %arg21[%c0_121, %c0_122, %c0_123] : memref<1x1x32xf32, #tpu.memory_space<vmem>>, vector<1x1x32xf32>
    %275 = vector.shape_cast %274 : vector<1x1x32xf32> to vector<1x32xf32>
    %276 = vector.broadcast %275 : vector<1x32xf32> to vector<9x32xf32>
    %277 = arith.addf %273, %276 : vector<9x32xf32>
    %278 = arith.addf %255, %277 : vector<9x32xf32>
    %c0_124 = arith.constant 0 : index
    %c0_125 = arith.constant 0 : index
    %c0_126 = arith.constant 0 : index
    %279 = vector.load %arg22[%c0_124, %c0_125, %c0_126] : memref<1x1x32xf32, #tpu.memory_space<vmem>>, vector<1x1x32xf32>
    %280 = vector.shape_cast %279 : vector<1x1x32xf32> to vector<1x32xf32>
    %c0_127 = arith.constant 0 : index
    %c0_128 = arith.constant 0 : index
    %c0_129 = arith.constant 0 : index
    %281 = vector.load %arg23[%c0_127, %c0_128, %c0_129] : memref<1x1x32xf32, #tpu.memory_space<vmem>>, vector<1x1x32xf32>
    %282 = vector.shape_cast %281 : vector<1x1x32xf32> to vector<1x32xf32>
    %cst_130 = arith.constant dense<0.000000e+00> : vector<9xf32>
    %283 = vector.multi_reduction <add>, %278, %cst_130 [1] : vector<9x32xf32> to vector<9xf32>
    %284 = vector.shape_cast %283 : vector<9xf32> to vector<9x1xf32>
    %cst_131 = arith.constant 3.200000e+01 : f32
    %285 = vector.broadcast %cst_131 : f32 to vector<9x1xf32>
    %286 = arith.divf %284, %285 : vector<9x1xf32>
    %287 = vector.broadcast %286 : vector<9x1xf32> to vector<9x32xf32>
    %288 = arith.subf %278, %287 : vector<9x32xf32>
    %289 = arith.mulf %288, %288 : vector<9x32xf32>
    %cst_132 = arith.constant dense<0.000000e+00> : vector<9xf32>
    %290 = vector.multi_reduction <add>, %289, %cst_132 [1] : vector<9x32xf32> to vector<9xf32>
    %291 = vector.shape_cast %290 : vector<9xf32> to vector<9x1xf32>
    %cst_133 = arith.constant 3.200000e+01 : f32
    %292 = vector.broadcast %cst_133 : f32 to vector<9x1xf32>
    %293 = arith.divf %291, %292 : vector<9x1xf32>
    %294 = vector.broadcast %286 : vector<9x1xf32> to vector<9x32xf32>
    %295 = arith.subf %278, %294 : vector<9x32xf32>
    %cst_134 = arith.constant 9.99999974E-6 : f32
    %296 = vector.broadcast %cst_134 : f32 to vector<9x1xf32>
    %297 = arith.addf %293, %296 : vector<9x1xf32>
    %298 = math.rsqrt %297 : vector<9x1xf32>
    %299 = vector.broadcast %298 : vector<9x1xf32> to vector<9x32xf32>
    %300 = arith.mulf %295, %299 : vector<9x32xf32>
    %301 = vector.broadcast %280 : vector<1x32xf32> to vector<9x32xf32>
    %302 = arith.mulf %300, %301 : vector<9x32xf32>
    %303 = vector.broadcast %282 : vector<1x32xf32> to vector<9x32xf32>
    %304 = arith.addf %302, %303 : vector<9x32xf32>
    %c0_135 = arith.constant 0 : index
    %c0_136 = arith.constant 0 : index
    %305 = vector.load %arg25[%c0_135, %c0_136] : memref<9x32xf32, #tpu.memory_space<vmem>>, vector<9x32xf32>
    tpu.vector_store %arg25[%c0_135, %c0_136], %304 {strides = array<i32>} : memref<9x32xf32, #tpu.memory_space<vmem>>, vector<9x32xf32>,
    %c1_i32 = arith.constant 1 : i32
    %306 = arith.cmpi eq, %arg1, %c1_i32 : i32
    %307 = arith.extui %306 : i1 to i32
    %c0_i32_137 = arith.constant 0 : i32
    %308 = arith.cmpi ne, %307, %c0_i32_137 : i32
    scf.if %308 {
      %c0_138 = arith.constant 0 : index
      %c0_139 = arith.constant 0 : index
      %c0_140 = arith.constant 0 : index
      %309 = vector.load %arg24[%c0_138, %c0_139, %c0_140] : memref<1x9x32xf32, #tpu.memory_space<vmem>>, vector<1x9x32xf32>
      %310 = vector.shape_cast %309 : vector<1x9x32xf32> to vector<9x32xf32>
      %311 = vector.shape_cast %304 : vector<9x32xf32> to vector<1x9x32xf32>
      tpu.vector_store %arg24[%c0_138, %c0_139, %c0_140], %311 {strides = array<i32>} : memref<1x9x32xf32, #tpu.memory_space<vmem>>, vector<1x9x32xf32>,
    } else {
    }
    return
  }
  func.func @transform_0(%arg0: i32, %arg1: i32) -> (i32, i32, i32) {
    %c0_i32 = arith.constant 0 : i32
    %c0_i32_0 = arith.constant 0 : i32
    %c0_i32_1 = arith.constant 0 : i32
    return %arg0, %c0_i32, %c0_i32_0 : i32, i32, i32
  }
  func.func @transform_1(%arg0: i32, %arg1: i32) -> (i32, i32, i32) {
    %c0_i32 = arith.constant 0 : i32
    %c0_i32_0 = arith.constant 0 : i32
    %c0_i32_1 = arith.constant 0 : i32
    return %arg0, %c0_i32, %c0_i32_0 : i32, i32, i32
  }
  func.func @transform_2(%arg0: i32, %arg1: i32) -> (i32, i32, i32) {
    %c0_i32 = arith.constant 0 : i32
    %c0_i32_0 = arith.constant 0 : i32
    %c0_i32_1 = arith.constant 0 : i32
    return %arg1, %c0_i32, %c0_i32_0 : i32, i32, i32
  }
  func.func @transform_3(%arg0: i32, %arg1: i32) -> (i32, i32, i32) {
    %c0_i32 = arith.constant 0 : i32
    %c0_i32_0 = arith.constant 0 : i32
    %c0_i32_1 = arith.constant 0 : i32
    return %arg1, %c0_i32, %c0_i32_0 : i32, i32, i32
  }
  func.func @transform_4(%arg0: i32, %arg1: i32) -> (i32, i32, i32) {
    %c0_i32 = arith.constant 0 : i32
    %c0_i32_0 = arith.constant 0 : i32
    %c0_i32_1 = arith.constant 0 : i32
    return %arg1, %c0_i32, %c0_i32_0 : i32, i32, i32
  }
  func.func @transform_5(%arg0: i32, %arg1: i32) -> (i32, i32, i32) {
    %c0_i32 = arith.constant 0 : i32
    %c0_i32_0 = arith.constant 0 : i32
    %c0_i32_1 = arith.constant 0 : i32
    return %arg1, %c0_i32, %c0_i32_0 : i32, i32, i32
  }
  func.func @transform_6(%arg0: i32, %arg1: i32) -> (i32, i32, i32) {
    %c0_i32 = arith.constant 0 : i32
    %c0_i32_0 = arith.constant 0 : i32
    %c0_i32_1 = arith.constant 0 : i32
    return %arg1, %c0_i32, %c0_i32_0 : i32, i32, i32
  }
  func.func @transform_7(%arg0: i32, %arg1: i32) -> (i32, i32, i32) {
    %c0_i32 = arith.constant 0 : i32
    %c0_i32_0 = arith.constant 0 : i32
    %c0_i32_1 = arith.constant 0 : i32
    return %arg1, %c0_i32, %c0_i32_0 : i32, i32, i32
  }
  func.func @transform_8(%arg0: i32, %arg1: i32) -> (i32, i32, i32) {
    %c0_i32 = arith.constant 0 : i32
    %c0_i32_0 = arith.constant 0 : i32
    %c0_i32_1 = arith.constant 0 : i32
    return %arg1, %c0_i32, %c0_i32_0 : i32, i32, i32
  }
  func.func @transform_9(%arg0: i32, %arg1: i32) -> (i32, i32, i32) {
    %c0_i32 = arith.constant 0 : i32
    %c0_i32_0 = arith.constant 0 : i32
    %c0_i32_1 = arith.constant 0 : i32
    return %arg1, %c0_i32, %c0_i32_0 : i32, i32, i32
  }
  func.func @transform_10(%arg0: i32, %arg1: i32) -> (i32, i32, i32) {
    %c0_i32 = arith.constant 0 : i32
    %c0_i32_0 = arith.constant 0 : i32
    %c0_i32_1 = arith.constant 0 : i32
    return %arg1, %c0_i32, %c0_i32_0 : i32, i32, i32
  }
  func.func @transform_11(%arg0: i32, %arg1: i32) -> (i32, i32, i32) {
    %c0_i32 = arith.constant 0 : i32
    %c0_i32_0 = arith.constant 0 : i32
    %c0_i32_1 = arith.constant 0 : i32
    return %arg1, %c0_i32, %c0_i32_0 : i32, i32, i32
  }
  func.func @transform_12(%arg0: i32, %arg1: i32) -> (i32, i32, i32) {
    %c0_i32 = arith.constant 0 : i32
    %c0_i32_0 = arith.constant 0 : i32
    %c0_i32_1 = arith.constant 0 : i32
    return %arg1, %c0_i32, %c0_i32_0 : i32, i32, i32
  }
  func.func @transform_13(%arg0: i32, %arg1: i32) -> (i32, i32, i32) {
    %c0_i32 = arith.constant 0 : i32
    %c0_i32_0 = arith.constant 0 : i32
    %c0_i32_1 = arith.constant 0 : i32
    return %arg1, %c0_i32, %c0_i32_0 : i32, i32, i32
  }
  func.func @transform_14(%arg0: i32, %arg1: i32) -> (i32, i32, i32) {
    %c0_i32 = arith.constant 0 : i32
    %c0_i32_0 = arith.constant 0 : i32
    %c0_i32_1 = arith.constant 0 : i32
    return %arg1, %c0_i32, %c0_i32_0 : i32, i32, i32
  }
  func.func @transform_15(%arg0: i32, %arg1: i32) -> (i32, i32, i32) {
    %c0_i32 = arith.constant 0 : i32
    %c0_i32_0 = arith.constant 0 : i32
    %c0_i32_1 = arith.constant 0 : i32
    return %arg1, %c0_i32, %c0_i32_0 : i32, i32, i32
  }
  func.func @transform_16(%arg0: i32, %arg1: i32) -> (i32, i32, i32) {
    %c0_i32 = arith.constant 0 : i32
    %c0_i32_0 = arith.constant 0 : i32
    %c0_i32_1 = arith.constant 0 : i32
    return %arg1, %c0_i32, %c0_i32_0 : i32, i32, i32
  }
  func.func @transform_17(%arg0: i32, %arg1: i32) -> (i32, i32, i32) {
    %c0_i32 = arith.constant 0 : i32
    %c0_i32_0 = arith.constant 0 : i32
    %c0_i32_1 = arith.constant 0 : i32
    return %arg1, %c0_i32, %c0_i32_0 : i32, i32, i32
  }
  func.func @transform_18(%arg0: i32, %arg1: i32) -> (i32, i32, i32) {
    %c0_i32 = arith.constant 0 : i32
    %c0_i32_0 = arith.constant 0 : i32
    %c0_i32_1 = arith.constant 0 : i32
    return %arg1, %c0_i32, %c0_i32_0 : i32, i32, i32
  }
  func.func @transform_19(%arg0: i32, %arg1: i32) -> (i32, i32, i32) {
    %c0_i32 = arith.constant 0 : i32
    %c0_i32_0 = arith.constant 0 : i32
    %c0_i32_1 = arith.constant 0 : i32
    return %arg1, %c0_i32, %c0_i32_0 : i32, i32, i32
  }
  func.func @transform_20(%arg0: i32, %arg1: i32) -> (i32, i32, i32) {
    %c0_i32 = arith.constant 0 : i32
    %c0_i32_0 = arith.constant 0 : i32
    %c0_i32_1 = arith.constant 0 : i32
    return %arg1, %c0_i32, %c0_i32_0 : i32, i32, i32
  }
  func.func @transform_21(%arg0: i32, %arg1: i32) -> (i32, i32, i32) {
    %c0_i32 = arith.constant 0 : i32
    %c0_i32_0 = arith.constant 0 : i32
    %c0_i32_1 = arith.constant 0 : i32
    return %arg1, %c0_i32, %c0_i32_0 : i32, i32, i32
  }
  func.func @transform_22(%arg0: i32, %arg1: i32) -> (i32, i32, i32) {
    %c0_i32 = arith.constant 0 : i32
    %c0_i32_0 = arith.constant 0 : i32
    %c0_i32_1 = arith.constant 0 : i32
    return %arg0, %c0_i32, %c0_i32_0 : i32, i32, i32
  }
}

</mosaic_0001>

<bundles_post_ra>
// kernel: cond_proj_decoder_m2mdm_forward.5
= control target key start
LH: loop header
LB: loop body
LE: loop exit
PB: predicated region body
PF: predicated region fallthrough
CT: control target
= control target key end

     0   :  { %v174_v0 = vmov 0.0|0.0   ;;  %vm175_vm0 = vmmov 0   ;;  %v176_v6 = vmov 0.0   ;;  %vm28_vm1 = vcmask 261120   ;;  %s236_s1 = inlined_call_operand.vmem [shape: f32[32,24], index: 1, kind: input, shape index: {}]   ;;  %s237_s0 = inlined_call_operand.vmem [shape: f32[18,32], index: 0, kind: input, shape index: {}]   ;;  %s238_s2 = inlined_call_operand.vmem [shape: f32[1,24], index: 2, kind: input, shape index: {}]   ;;  %s239_s3 = inlined_call_operand.vmem [shape: f32[2,8,24], index: 3, kind: output, shape index: {}]  }
   0x1   :  { %167 = vmatprep.subr.bf16.mxu1 %v174_v0  ;;  %v17_v1 = vld [vmem:[%s236_s1] sm:$0xff]  ;;  %v18_v2 = vld [vmem:[%s236_s1 + $0x8] sm:$0xff]  ;;  %161 = vmatprep.subr.bf16.mxu0 %v174_v0  ;;  %v19_v3 = vld [vmem:[%s236_s1 + $0x10] sm:$0xff]  ;;  %vm120_vm2 = vcmask 188416   ;;  %vm123_vm3 = vcmask 195586   ;;  %vm118_vm4 = vcmask 195585  }
   0x2   :  { %v162_v4 = vpack.c.bf16 %v18_v2, %v17_v1  ;;  %v20_v5 = vld [vmem:[%s236_s1 + $0x18] sm:$0xff]  ;;  %155 = vmatprep.mubr.msk.f32.mxu1 %vm175_vm0, %v176_v6  ;;  %152 = vmatprep.mubr.msk.f32.mxu0 %vm175_vm0, %v176_v6  ;;  %v15_v8 = vld [vmem:[%s237_s0 + $0x8] sm:$0xff]  ;;  %v14_v9 = vld [vmem:[%s237_s0] sm:$0xff]  ;;  %vm125_vm5 = vcmask 189440  }
   0x3   :  { %v165_v7 = vpack.c.bf16 %v20_v5, %v19_v3  ;;  %v16_v10 = vld [vmem:[%s237_s0 + $0x10] sm:$0x3]  ;;  %v131_v11 = vld [vmem:[%s238_s2] ss:$0 sm:$0xff] }
   0x4   :  { %169 = vmatpush3.bf16.msra.mxu1 %v162_v4  ;;  %163 = vmatpush3.bf16.msra.mxu0 %v162_v4 }
   0x5   :  { %168 = vmatprep.subr.bf16.mxu1 %v174_v0  ;;  %164 = vmatprep.subr.bf16.mxu0 %v174_v0 }
   0x8   :  { %170 = vmatpush3.bf16.msra.mxu1 %v165_v7  ;;  %166 = vmatpush3.bf16.msra.mxu0 %v165_v7 }
   0xb   :  { %156 = vmatmul.mubr.msk.f32.vlgmr.msra.gmra.mrb[0].mxu1 %vm28_vm1, %v15_v8  ;;  %153 = vmatmul.mubr.msk.f32.vlgmr.msra.gmra.mrb[0].mxu0 %vm28_vm1, %v14_v9 }
   0xc   :  { %158 = vmatprep.mubr.msk.f32.mxu1 %vm175_vm0, %v176_v6 }
   0xf   :  { %159 = vmatmul.mubr.msk.f32.gmra.mrb[2].mxu1 %vm28_vm1, %v16_v10 }
  0xde   :  { %v109_v12 = vpop.f32.mrb[0].mxu1  ;;  %v104_v13 = vpop.f32.mrb[0].mxu0 }
  0xdf   :  { %v110_v14 = vadd.f32 %v131_v11, %v109_v12  ;;  %v157_v15 = vpop.f32.mrb[1].mxu1  ;;  %v105_v16 = vadd.f32 %v131_v11, %v104_v13  ;;  %v154_v17 = vpop.f32.mrb[1].mxu0 }
  0xe1   :  { %121 = vst.msk [vmem:[%s239_s3 + $0x7] sm:$0x1] %vm120_vm2, %v110_v14 }
  0xe2   :  { %135 = vst.msk [vmem:[%s239_s3 + $0x6] sm:$0xfc] %vm123_vm3, %v110_v14  ;;  %v114_v18 = vpop.f32.mrb[2].mxu1 }
  0xe3   :  { %119 = vst.msk [vmem:[%s239_s3 - $0x1] sm:$0xfe] %vm118_vm4, %v105_v16  ;;  %v115_v19 = vadd.f32 %v131_v11, %v114_v18  ;;  %v160_v20 = vpop.f32.mrb[3].mxu1 }
  0xe5   :  { %136 = vst.msk [vmem:[%s239_s3 + $0xe] sm:$0x3] %vm125_vm5, %v115_v19 }

// kernel: cond_proj_decoder_m2mdm_forward.3
= control target key start
LH: loop header
LB: loop body
LE: loop exit
PB: predicated region body
PF: predicated region fallthrough
CT: control target
= control target key end

     0   :  { %v694_v0 = vmov 0.0|0.0   ;;  %vm695_vm0 = vmmov 0   ;;  %v696_v4 = vmov 0.0   ;;  %vm61_vm1 = vcmask 261120   ;;  %s909_s4 = inlined_call_operand.vmem [shape: f32[32,32], index: 4, kind: input, shape index: {}]   ;;  %s910_s0 = inlined_call_operand.vmem [shape: f32[2,32], index: 0, kind: input, shape index: {}]   ;;  %s911_s6 = inlined_call_operand.vmem [shape: f32[32,32], index: 6, kind: input, shape index: {}]   ;;  %s912_s12 = inlined_call_operand.vmem [shape: f32[24,32], index: 12, kind: input, shape index: {}]   ;;  %s913_s5 = inlined_call_operand.vmem [shape: f32[1,32], index: 5, kind: input, shape index: {}]   ;;  %s914_s2 = inlined_call_operand.vmem [shape: f32[16,24], index: 2, kind: input, shape index: {}]   ;;  %s915_s8 = inlined_call_operand.vmem [shape: f32[24,32], index: 8, kind: input, shape index: {}]   ;;  %s916_s1 = inlined_call_operand.vmem [shape: f32[16,24], index: 1, kind: input, shape index: {}]   ;;  %s917_s10 = inlined_call_operand.vmem [shape: f32[32,32], index: 10, kind: input, shape index: {}]   ;;  %s918_s7 = inlined_call_operand.vmem [shape: f32[1,32], index: 7, kind: input, shape index: {}]   ;;  %s919_s15 = inlined_call_operand.vmem [shape: f32[2,9,32], index: 15, kind: output, shape index: {1}]   ;;  %s920_s13 = inlined_call_operand.vmem [shape: f32[1,32], index: 13, kind: input, shape index: {}]   ;;  %s921_s3 = inlined_call_operand.vmem [shape: f32[9,32], index: 3, kind: input, shape index: {}]   ;;  %s922_s9 = inlined_call_operand.vmem [shape: f32[1,32], index: 9, kind: input, shape index: {}]   ;;  %s923_s14 = inlined_call_operand.vmem [shape: f32[2,9,32], index: 14, kind: output, shape index: {0}]   ;;  %s924_s11 = inlined_call_operand.vmem [shape: f32[1,32], index: 11, kind: input, shape index: {}]  }
   0x1   :  { %659 = vmatprep.subr.bf16.mxu0 %v694_v0  ;;  %v50_v1 = vld [vmem:[%s909_s4] sm:$0xff]  ;;  %v51_v2 = vld [vmem:[%s909_s4 + $0x8] sm:$0xff]  ;;  %v52_v3 = vld [vmem:[%s909_s4 + $0x10] sm:$0xff]  ;;  %616 = vmatprep.mubr.msk.f32.mxu0 %vm695_vm0, %v696_v4  ;;  %vm238_vm2 = vcmask 195584   ;;  %vm508_vm3 = vcmask 253952   ;;  %vm523_vm4 = vcmask 1040384  }
   0x2   :  { %v660_v5 = vpack.c.bf16 %v51_v2, %v50_v1  ;;  %v53_v6 = vld [vmem:[%s909_s4 + $0x18] sm:$0xff]  ;;  %665 = vmatprep.subr.bf16.mxu1 %v694_v0  ;;  %627 = vmatprep.mubr.msk.f32.mxu1 %vm695_vm0, %v696_v4  ;;  %v49_v8 = vld [vmem:[%s910_s0] sm:$0x3]  ;;  %v143_v10 = vld [vmem:[%s911_s6 + $0x8] sm:$0xff] }
   0x3   :  { %v663_v7 = vpack.c.bf16 %v53_v6, %v52_v3  ;;  %v142_v9 = vld [vmem:[%s911_s6] sm:$0xff]  ;;  %v144_v12 = vld [vmem:[%s911_s6 + $0x10] sm:$0xff]  ;;  %v145_v13 = vld [vmem:[%s911_s6 + $0x18] sm:$0xff] }
   0x4   :  { %661 = vmatpush3.bf16.msra.mxu0 %v660_v5  ;;  %v666_v11 = vpack.c.bf16 %v143_v10, %v142_v9  ;;  %v669_v14 = vpack.c.bf16 %v145_v13, %v144_v12  ;;  %v228_v15 = vld [vmem:[%s912_s12] sm:$0xff]  ;;  %v229_v16 = vld [vmem:[%s912_s12 + $0x8] sm:$0xff]  ;;  %v230_v28 = vld [vmem:[%s912_s12 + $0x10] sm:$0xff] }
   0x5   :  { %662 = vmatprep.subr.bf16.mxu0 %v694_v0  ;;  %v671_v17 = vpack.c.bf16 %v229_v16, %v228_v15  ;;  %v564_v18 = vld [vmem:[%s913_s5] ss:$0 sm:$0xff]  ;;  %v325_v30 = vld [vmem:[%s915_s8 + $0x8] sm:$0xff]  ;;  %v326_v34 = vld [vmem:[%s915_s8 + $0x10] sm:$0xff] }
   0x6   :  { %667 = vmatpush3.bf16.msra.mxu1 %v666_v11  ;;  %v226_v27 = vld [vmem:[%s914_s2] sm:$0xff]  ;;  %v227_v32 = vld [vmem:[%s914_s2 + $0x8] sm:$0xff]  ;;  %v417_v39 = vld [vmem:[%s917_s10 + $0x10] sm:$0xff] }
   0x7   :  { %668 = vmatprep.subr.bf16.mxu1 %v694_v0  ;;  %v324_v29 = vld [vmem:[%s915_s8] sm:$0xff]  ;;  %v323_v35 = vld [vmem:[%s916_s1 + $0x8] sm:$0xff]  ;;  %v418_v40 = vld [vmem:[%s917_s10 + $0x18] sm:$0xff] }
   0x8   :  { %664 = vmatpush3.bf16.msra.mxu0 %v663_v7  ;;  %v675_v31 = vpack.c.bf16 %v325_v30, %v324_v29  ;;  %v322_v33 = vld [vmem:[%s916_s1] sm:$0xff]  ;;  %v416_v37 = vld [vmem:[%s917_s10 + $0x8] sm:$0xff]  ;;  %v683_v41 = vpack.c.bf16 %v418_v40, %v417_v39 }
   0x9   :  { %v415_v36 = vld [vmem:[%s917_s10] sm:$0xff]  ;;  %v321_v51 = vld [vmem:[%s921_s3 + $0x8] sm:$0x1] }
   0xa   :  { %670 = vmatpush3.bf16.msra.mxu1 %v669_v14  ;;  %v679_v38 = vpack.c.bf16 %v416_v37, %v415_v36  ;;  %v567_v42 = vld [vmem:[%s918_s7] ss:$0 sm:$0xff] }
   0xb   :  { %617 = vmatmul.mubr.msk.f32.vlgmr.msra.gmra.mrb[0].mxu0 %vm61_vm1, %v49_v8  ;;  %672 = vmatprep.subr.bf16.mxu1 %v671_v17  ;;  %v569_v47 = vld [vmem:[%s920_s13] ss:$0 sm:$0xff] }
   0xc   :  { %680 = vmatprep.subr.bf16.mxu0 %v679_v38  ;;  %v572_v56 = vld [vmem:[%s922_s9] ss:$0 sm:$0xff] }
   0xd   :  { %682 = vmatpush3.bf16.msra.mxu0 %v679_v38  ;;  %v575_v62 = vld [vmem:[%s924_s11] ss:$0 sm:$0xff] }
   0xe   :  { %684 = vmatprep.subr.bf16.mxu0 %v683_v41 }
  0x11   :  { %686 = vmatpush3.bf16.msra.mxu0 %v683_v41 }
  0xde   :  { %v131_v19 = vpop.f32.mrb[0].mxu0 }
  0xdf   :  { %v132_v20 = vadd.f32 %v564_v18, %v131_v19  ;;  %v618_v21 = vpop.f32.mrb[1].mxu0 }
  0xe1   :  { %v566_v22 = vmul.f32 -1.442695, %v132_v20 }
  0xe3   :  { %690 = vpow2.f32 %v566_v22 }
  0xed   :  { %v691_v23 = vpop.eup %690 }
  0xee   :  { %v138_v24 = vadd.f32 1.0, %v691_v23 }
  0xf0   :  { %692 = vrcp.f32 %v138_v24 }
  0xfa   :  { %v693_v25 = vpop.eup %692 }
  0xfb   :  { %v141_v26 = vmul.f32 %v693_v25, %v132_v20  ;;  %v320_v20 = vld [vmem:[%s921_s3] sm:$0xff] }
  0xfd   :  { %628 = vmatmul.mubr.msk.f32.vlgmr.msra.gmra.mrb[0].mxu1 %vm61_vm1, %v141_v26 }
  0xfe   :  { %674 = vmatpush3.bf16.msra.mxu1 %v671_v17  ;;  %636 = vmatprep.mubr.msk.f32.mxu1 %vm238_vm2, %v226_v27 }
  0xff   :  { %634 = vmatprep.subr.mxu1 %v230_v28 }
 0x102   :  { %635 = vmatpush3.msra.mxu1 %v230_v28 }
 0x103   :  { %637 = vmatmul.mubr.msk.f32.vlgmr.msra.gmra.mrb[2].mxu1 %vm238_vm2, %v227_v32  ;;  %676 = vmatprep.subr.bf16.mxu1 %v675_v31 }
 0x104   :  { %678 = vmatpush3.bf16.msra.mxu1 %v675_v31  ;;  %645 = vmatprep.mubr.msk.f32.mxu1 %vm238_vm2, %v322_v33 }
 0x105   :  { %643 = vmatprep.subr.mxu1 %v326_v34 }
 0x108   :  { %644 = vmatpush3.msra.mxu1 %v326_v34 }
 0x109   :  { %646 = vmatmul.mubr.msk.f32.vlgmr.msra.gmra.mrb[4].mxu1 %vm238_vm2, %v323_v35 }
 0x1d0   :  { %v222_v43 = vpop.f32.mrb[0].mxu1 }
 0x1d1   :  { %v223_v44 = vadd.f32 %v567_v42, %v222_v43  ;;  %v629_v45 = vpop.f32.mrb[1].mxu1 }
 0x1d3   :  { %509 = vst.msk [vmem:[%s919_s15 + $0x8] sm:$0x1] %vm508_vm3, %v223_v44  ;;  %v530_v46 = vrot.slane %v223_v44, 1 }
 0x1d5   :  { %579 = vst.msk [vmem:[%s919_s15 + $0x18] sm:$0x1] %vm508_vm3, %v530_v46 }
 0x1d6   :  { %v638_v48 = vpop.f32.mrb[2].mxu1 }
 0x1d7   :  { %v317_v49 = vadd.f32 %v638_v48, %v569_v47  ;;  %v311_v50 = vpop.f32.mrb[3].mxu1 }
 0x1d8   :  { %v312_v52 = vadd.f32 %v569_v47, %v311_v50 }
 0x1d9   :  { %v548_v53 = vrot.slane %v317_v49, 7 }
 0x1da   :  { %v521_v54 = vrot.slane %v312_v52, 7 }
 0x1db   :  { %v552_v55 = vadd.f32 %v548_v53, %v321_v51 }
 0x1dc   :  { %v526_v57 = vadd.f32 %v521_v54, %v321_v51  ;;  %v647_v58 = vpop.f32.mrb[4].mxu1 }
 0x1dd   :  { %581 = vst.msk [vmem:[%s923_s14 + $0x18] sm:$0x1] %vm508_vm3, %v552_v55  ;;  %v406_v59 = vpop.f32.mrb[5].mxu1  ;;  %v412_v61 = vadd.f32 %v647_v58, %v572_v56 }
 0x1de   :  { %528 = vst.msk [vmem:[%s923_s14 + $0x8] sm:$0x1] %vm508_vm3, %v526_v57  ;;  %v407_v60 = vadd.f32 %v572_v56, %v406_v59 }
 0x1e0   :  { %656 = vmatprep.mubr.msk.f32.mxu0 %vm61_vm1, %v407_v60 }
 0x1e1   :  { %657 = vmatmul.mubr.msk.f32.vlgmr.msra.gmra.mrb[2].mxu0 %vm61_vm1, %v412_v61 }
 0x2b4   :  { %v658_v63 = vpop.f32.mrb[2].mxu0 }
 0x2b5   :  { %v504_v0 = vadd.f32 %v658_v63, %v575_v62  ;;  %v498_v1 = vpop.f32.mrb[3].mxu0 }
 0x2b6   :  { %v499_v2 = vadd.f32 %v575_v62, %v498_v1 }
 0x2b7   :  { %578 = vst.msk [vmem:[%s919_s15 + $0x10] sm:$0xff] %vm61_vm1, %v504_v0  ;;  %v535_v3 = vsel %vm61_vm1, %v504_v0, 0.0 }
 0x2b8   :  { %v536_v4 = vrot.slane %v535_v3, 4  ;;  %507 = vst.msk [vmem:[%s919_s15] sm:$0xff] %vm61_vm1, %v499_v2  ;;  %v510_v5 = vsel %vm61_vm1, %v499_v2, 0.0 }
 0x2b9   :  { %v511_v6 = vrot.slane %v510_v5, 4 }
 0x2ba   :  { %v537_v7 = vadd.f32 %v536_v4, %v535_v3 }
 0x2bb   :  { %v512_v8 = vadd.f32 %v511_v6, %v510_v5 }
 0x2bc   :  { %v538_v9 = vrot.slane %v537_v7, 2 }
 0x2bd   :  { %v513_v10 = vrot.slane %v512_v8, 2 }
 0x2be   :  { %v539_v11 = vadd.f32 %v538_v9, %v537_v7 }
 0x2bf   :  { %v514_v12 = vadd.f32 %v513_v10, %v512_v8 }
 0x2c0   :  { %v540_v13 = vrot.slane %v539_v11, 1 }
 0x2c1   :  { %v515_v14 = vrot.slane %v514_v12, 1 }
 0x2c2   :  { %v541_v15 = vadd.f32 %v540_v13, %v539_v11 }
 0x2c3   :  { %v516_v16 = vadd.f32 %v515_v14, %v514_v12 }
 0x2c4   :  { %v542_v17 = vmul.f32 0.125, %v541_v15 }
 0x2c5   :  { %v518_v18 = vmul.f32 0.125, %v516_v16 }
 0x2c6   :  { %v543_v19 = vadd.f32 %v542_v17, %v223_v44 }
 0x2c7   :  { %v519_v21 = vadd.f32 %v518_v18, %v223_v44 }
 0x2c8   :  { %v545_v22 = vrot.slane %v543_v19, 1 }
 0x2c9   :  { %v524_v23 = vsel %vm523_vm4, %v519_v21, %v521_v54 }
 0x2ca   :  { %v550_v24 = vsel %vm523_vm4, %v545_v22, %v548_v53  ;;  %v525_v25 = vadd.f32 %v524_v23, %v320_v20 }
 0x2cb   :  { %v551_v26 = vadd.f32 %v550_v24, %v320_v20 }
 0x2cc   :  { %527 = vst.msk [vmem:[%s923_s14] sm:$0xff] %vm61_vm1, %v525_v25 }
 0x2cd   :  { %580 = vst.msk [vmem:[%s923_s14 + $0x10] sm:$0xff] %vm61_vm1, %v551_v26 }

// kernel: cond_proj_decoder_m2mdm_forward.4
= control target key start
LH: loop header
LB: loop body
LE: loop exit
PB: predicated region body
PF: predicated region fallthrough
CT: control target
= control target key end

     0   :  { %s5262_s28 = smov 0   ;;  %s5264_s29 = smov 0   ;;  %s5786_s0 = inlined_call_operand.vmem [shape: f32[2,9,32], index: 0, kind: input, shape index: {}]   ;;  %s5787_s1 = inlined_call_operand.vmem [shape: f32[2,9,32], index: 1, kind: input, shape index: {}]   ;;  %s5788_s2 = inlined_call_operand.vmem [shape: f32[2,32,96], index: 2, kind: input, shape index: {}]   ;;  %s5789_s3 = inlined_call_operand.vmem [shape: f32[2,1,96], index: 3, kind: input, shape index: {}]   ;;  %s5790_s4 = inlined_call_operand.vmem [shape: f32[2,32,32], index: 4, kind: input, shape index: {}]   ;;  %s5791_s5 = inlined_call_operand.vmem [shape: f32[2,1,32], index: 5, kind: input, shape index: {}]   ;;  %s5792_s6 = inlined_call_operand.vmem [shape: f32[2,1,32], index: 6, kind: input, shape index: {}]   ;;  %s5793_s7 = inlined_call_operand.vmem [shape: f32[2,1,32], index: 7, kind: input, shape index: {}]   ;;  %s5794_s8 = inlined_call_operand.vmem [shape: f32[2,32,32], index: 8, kind: input, shape index: {}]   ;;  %s5795_s9 = inlined_call_operand.vmem [shape: f32[2,1,32], index: 9, kind: input, shape index: {}]   ;;  %s5796_s10 = inlined_call_operand.vmem [shape: f32[2,32,64], index: 10, kind: input, shape index: {}]   ;;  %s5797_s11 = inlined_call_operand.vmem [shape: f32[2,1,64], index: 11, kind: input, shape index: {}]   ;;  %s5798_s12 = inlined_call_operand.vmem [shape: f32[2,32,32], index: 12, kind: input, shape index: {}]   ;;  %s5799_s13 = inlined_call_operand.vmem [shape: f32[2,1,32], index: 13, kind: input, shape index: {}]   ;;  %s5800_s14 = inlined_call_operand.vmem [shape: f32[2,1,32], index: 14, kind: input, shape index: {}]   ;;  %s5801_s15 = inlined_call_operand.vmem [shape: f32[2,1,32], index: 15, kind: input, shape index: {}]   ;;  %s5802_s16 = inlined_call_operand.vmem [shape: f32[2,32,64], index: 16, kind: input, shape index: {}]   ;;  %s5803_s17 = inlined_call_operand.vmem [shape: f32[2,1,64], index: 17, kind: input, shape index: {}]   ;;  %s5804_s18 = inlined_call_operand.vmem [shape: f32[2,64,32], index: 18, kind: input, shape index: {}]   ;;  %s5805_s19 = inlined_call_operand.vmem [shape: f32[2,1,32], index: 19, kind: input, shape index: {}]   ;;  %s5806_s20 = inlined_call_operand.vmem [shape: f32[2,1,32], index: 20, kind: input, shape index: {}]   ;;  %s5807_s21 = inlined_call_operand.vmem [shape: f32[2,1,32], index: 21, kind: input, shape index: {}]   ;;  %s5808_s22 = inlined_call_operand.vmem [shape: f32[2,9,32], index: 22, kind: output, shape index: {}]  }
   0x1   :  { %5816 = sst [smem:[#allocation12_spill]] %s5786_s0  ;;  %s5266_s30 = smov 0  }
   0x2   :  { %5817 = sst [smem:[#allocation13_spill]] %s5787_s1 }
   0x3   :  { %5818 = sst [smem:[#allocation14_spill]] %s5788_s2 }
   0x4   :  { %5819 = sst [smem:[#allocation15_spill]] %s5789_s3  ;;  %s5260_s3 = smov 0  }
   0x5   :  { %5820 = sst [smem:[#allocation16_spill]] %s5790_s4  ;;  %s5268_s4 = smov 0  }
   0x6   :  { %5821 = sst [smem:[#allocation17_spill]] %s5791_s5 }
   0x7   :  { %5822 = sst [smem:[#allocation18_spill]] %s5792_s6 }
   0x8   :  { %5823 = sst [smem:[#allocation19_spill]] %s5794_s8 }
   0x9   :  { %5824 = sst [smem:[#allocation20_spill]] %s5796_s10 }
   0xa   :  { %5825 = sst [smem:[#allocation21_spill]] %s5798_s12 }
   0xb   :  { %5826 = sst [smem:[#allocation22_spill]] %s5799_s13 }
   0xc   :  { %5827 = sst [smem:[#allocation23_spill]] %s5800_s14 }
   0xd   :  { %5828 = sst [smem:[#allocation24_spill]] %s5801_s15 }
   0xe   :  { %5829 = sst [smem:[#allocation25_spill]] %s5802_s16 }
   0xf   :  { %5830 = sst [smem:[#allocation26_spill]] %s5803_s17 }
  0x10   :  { %5831 = sst [smem:[#allocation27_spill]] %s5804_s18 }
  0x11   :  { %5832 = sst [smem:[#allocation28_spill]] %s5805_s19 }
  0x12   :  { %5833 = sst [smem:[#allocation29_spill]] %s5806_s20 }
  0x13   :  { %5834 = sst [smem:[#allocation30_spill]] %s5807_s21 }
  0x14   :  { %5835 = sst [smem:[#allocation31_spill]] %s5808_s22 }
  0x15 LB: > { %5836 = sst [smem:[#allocation3_spill]] %s5115_s3  ;;  %s41_s0 = sadd.s32 1, %s5123_s29  ;;  %s5131_s4 = sphi %s5268_s4, %s32_s4   ;;  %s5127_s30 = sphi %s5266_s30, %s5898_s30   ;;  %s5123_s29 = sphi %s5264_s29, %s5897_s29   ;;  %s5119_s28 = sphi %s5262_s28, %s5896_s28   ;;  %s5115_s3 = sphi %s5260_s3, %s5895_s3  }
  0x16   : > { %5837 = sst [smem:[#allocation4_spill]] %s5123_s29  ;;  %s44_s23 = sadd.s32 1, %s5127_s30 }
  0x17   : > { %5838 = sst [smem:[#allocation5_spill]] %s5127_s30  ;;  %p42_p0 = scmp.ge.s32.totalorder %s41_s0, 2 }
  0x18   : > { %5839 = sst [smem:[#allocation6_spill]] %s5131_s4  ;;  %p4263_p1 = scmp.ge.s32.totalorder %s5131_s4, 1 }
  0x19   : > { %p808_p2 = scmp.lt.s32.totalorder %s5131_s4, 5  ;;  %s5900_s0 = smov (%p42_p0, %s41_s0), 0 }
  0x1a   : > { %5840 = sst [smem:[#allocation7_spill]] %s5900_s0  ;;  %s5902_s23 = smov (!%p42_p0, %s44_s23), %s5127_s30 }
  0x1b   : > { %p809_p3 = pnand %p4263_p1, %p808_p2  ;;  %p46_p4 = scmp.ge.s32.totalorder %s5902_s23, 2 }
  0x1d   : > { %s5904_s23 = smov (%p46_p4, %s5902_s23), 0  ;;  %812 = sbr.rel (%p809_p3) target bundleno = 5176 (0x1438), region = 108 }
  0x1e   : > { %5841 = sst [smem:[#allocation8_spill]] %s5904_s23 }
  0x24   : > { %p949_p5 = scmp.lt.s32.totalorder %s5119_s28, 1  ;;  %p959_p6 = scmp.lt.s32.totalorder %s5115_s3, 1 }
  0x25   : > { %s5842_s25 = sld [smem:[#allocation12_spill]]  ;;  %s5843_s23 = sld [smem:[#allocation13_spill]] }
  0x26   : > { %s5906_s28 = smov (!%p949_p5, %s5119_s28), 1  ;;  %s5851_s8 = sld [smem:[#allocation19_spill]] }
  0x27   : > { %s5294_s1 = scalar_select %p959_p6, %s5115_s3, 1 }
  0x28   : > { %s4383_s5 = sshll.u32 %s5906_s28, 4  ;;  %s5846_s28 = sld [smem:[#allocation14_spill]] }
  0x29   : > { %s4385_s30 = sshll.u32 %s5294_s1, 5  ;;  %s5852_s10 = sld [smem:[#allocation20_spill]] }
  0x2a   : > { %s5853_s12 = sld [smem:[#allocation21_spill]]  ;;  %s5858_s16 = sld [smem:[#allocation25_spill]] }
  0x2b   : > { %s953_s26 = scalar_lea.vmem %s5842_s25, %s4383_s5  ;;  %s5302_s0 = scalar_lea.vmem %s5843_s23, %s4383_s5 }
  0x2c   : > { %5844 = sst [smem:[#allocation9_spill]] %s5302_s0  ;;  %s5848_s25 = sld [smem:[#allocation16_spill]] }
  0x2d   : > { %s5334_s24 = scalar_lea.vmem %s5851_s8, %s4385_s30  ;;  %s5860_s0 = sld [smem:[#allocation27_spill]] }
  0x2e   : > { %s5312_s19 = scalar_lea.vmem %s5846_s28, %s4385_s30  ;;  %s5861_s2 = sld [smem:[#allocation28_spill]] }
  0x2f   : > { %5847 = sst [smem:[#allocation10_spill]] %s5312_s19  ;;  %s5343_s17 = scalar_lea.vmem %s5852_s10, %s4385_s30 }
  0x30   : > { %s5352_s3 = scalar_lea.vmem %s5853_s12, %s4385_s30  ;;  %s5369_s4 = scalar_lea.vmem %s5858_s16, %s4385_s30 }
  0x31   : > { %5854 = sst [smem:[#allocation11_spill]] %s5352_s3  ;;  %s4391_s3 = sshll.u32 %s5294_s1, 6 }
  0x32   : > { %s5317_s18 = scalar_lea.vmem %s5848_s25, %s4385_s30  ;;  %s5862_s15 = sld [smem:[#allocation29_spill]] }
  0x33   : > { %s5379_s13 = scalar_lea.vmem %s5860_s0, %s4391_s3  ;;  %s5863_s16 = sld [smem:[#allocation30_spill]] }
  0x34   : > { %s1026_s23 = scalar_lea.vmem %s5861_s2, %s5294_s1  ;;  %s5864_s20 = sld [smem:[#allocation31_spill]] }
  0x35   : > { %s5865_s19 = sld [smem:[#allocation3_spill]] }
  0x38   : > { %s1029_s10 = scalar_lea.vmem %s5862_s15, %s5294_s1 }
  0x39   : > { %s1032_s14 = scalar_lea.vmem %s5863_s16, %s5294_s1 }
  0x3a   : > { %s5396_s12 = scalar_lea.vmem %s5864_s20, %s4383_s5 }
  0x3b   : > { %p4284_p7 = scmp.ne.s32.totalorder %s5865_s19, 0 }
  0x3c   : > { %v1042_v0 = vld [vmem:[%s953_s26] sm:$0xff] (!%p4284_p7)  ;;  %vm1044_vm0 = vcmask (!%p4284_p7), 261120   ;;  %v1043_v1 = vld [vmem:[%s953_s26 + $0x8] sm:$0x1] (!%p4284_p7)  ;;  %vm1046_vm1 = vcmask (!%p4284_p7), 253952  }
  0x3d   : > { %1041 = sbr.rel (%p4284_p7) target bundleno = 68 (0x44), region = 112  ;;  %1045 = vst.msk [vmem:[#allocation2] sm:$0xff] (!%p4284_p7), %vm1044_vm0, %v1042_v0 }
  0x3e   : > { %1047 = vst.msk [vmem:[#allocation2 + $0x8] sm:$0x1] (!%p4284_p7), %vm1046_vm1, %v1043_v1 }
  0x44 PF: > { %s5866_s8 = sld [smem:[#allocation10_spill]]  ;;  %vm1063_vm2 = vcmask 261120   ;;  %v5403_v7 = vld [vmem:[#allocation2] sm:$0xff]  ;;  %s5867_s0 = sld [smem:[#allocation15_spill]]  ;;  %vm1156_vm3 = vcmask 64512   ;;  %vm1246_vm5 = vcmask 65536  }
  0x45   : > { %4523 = vmatprep.mubr.msk.f32.mxu1 %vm1063_vm2, %v5403_v7  ;;  %v5407_v9 = vld [vmem:[#allocation2 + $0x8] sm:$0x1]  ;;  %s5133_s26 = smov 120   ;;  %s5134_s3 = smov 96   ;;  %vm5442_vm4 = vmpackc.low %vm1156_vm3, %vm1156_vm3  ;;  %vm1242_vm6 = vcmask 72704   ;;  %vm1277_vm7 = vcmask 1040384  }
  0x46   : > { %s5135_s2 = smov 88   ;;  %s5136_s28 = smov 112   ;;  %vm5144_vm8 = vmmov 1   ;;  %vm2307_vm10 = vcmask 253952   ;;  %vm3844_vm11 = vcmask 523264  }
  0x47   : > { %s5137_s6 = smov 80   ;;  %s5138_s25 = smov 56   ;;  %vm5491_vm9 = vmpackc.low %vm1277_vm7, %vm5144_vm8 }
  0x48   : > { %s5139_s27 = smov 72   ;;  %s5140_s30 = smov 64  }
  0x49   : > { %s5141_s29 = smov 104   ;;  %s5142_s21 = smov 48  }
  0x4a   : > { %v1052_v2 = vld [vmem:[%s5866_s8] sm:$0xff]  ;;  %v1053_v3 = vld [vmem:[%s5866_s8 + $0x8] sm:$0xff]  ;;  %v1054_v4 = vld [vmem:[%s5866_s8 + $0x10] sm:$0xff]  ;;  %s5868_s5 = scalar_lea.vmem %s5867_s0, %s5294_s1  ;;  %s5143_s22 = smov 40  }
  0x4b   : > { %v4730_v5 = vpack.c.bf16 %v1053_v3, %v1052_v2  ;;  %v1055_v6 = vld [vmem:[%s5866_s8 + $0x18] sm:$0xff]  ;;  %v4285_v10 = vld [vmem:[%s5868_s5] ss:$0 sm:$0xff]  ;;  %s5873_s19 = sld [smem:[#allocation17_spill]]  ;;  %s5876_s0 = sld [smem:[#allocation18_spill]] }
  0x4c   : > { %v4734_v8 = vpack.c.bf16 %v1055_v6, %v1054_v4  ;;  %s5875_s15 = sld [smem:[#allocation9_spill]] }
  0x4d   : > { %4731 = vmatprep.subr.bf16.mxu1 %v4730_v5 }
  0x4e   : > { %4733 = vmatpush3.bf16.msra.mxu1 %v4730_v5 }
  0x4f   : > { %4735 = vmatprep.subr.bf16.mxu1 %v4734_v8 }
  0x51   : > { %s5874_s8 = scalar_lea.vmem %s5873_s19, %s5294_s1  ;;  %s5877_s5 = scalar_lea.vmem %s5876_s0, %s5294_s1 }
  0x52   : > { %4737 = vmatpush3.bf16.msra.mxu1 %v4734_v8  ;;  %s5886_s0 = sld [smem:[#allocation24_spill]] }
  0x55   : > { %4524 = vmatmul.mubr.msk.f32.vlgmr.msra.gmra.mrb[0].mxu1 %vm1063_vm2, %v5407_v9 }
 0x128   : > { %v4525_v11 = vpop.f32.mrb[0].mxu1 }
 0x129   : > { %v5416_v12 = vadd.f32 %v4525_v11, %v4285_v10  ;;  %v1136_v13 = vpop.f32.mrb[1].mxu1 }
 0x12a   : > { %v5418_v14 = vadd.f32 %v4285_v10, %v1136_v13 }
 0x12c   : > { %1355 = vrot.lane.b32.xlu1 %v5418_v14, %s5133_s26  ;;  %4530 = vmatprep.mubr.msk.f32.mxu1 %vm1156_vm3, %v5418_v14  ;;  %v5426_v15 = vpack.i.bf16 %v5416_v12, %v5418_v14 }
 0x12e   : > { %4939 = vrot.lane.b32.xlu0 %v5426_v15, %s5134_s3 }
 0x130   : > { %1357 = vrot.lane.b32.xlu1 %v5416_v12, %s5133_s26 }
 0x132   : > { %4944 = vrot.lane.b32.xlu0 %v5426_v15, %s5135_s2 }
 0x134   : > { %1720 = vrot.lane.b32.xlu1 %v5418_v14, %s5136_s28 }
 0x136   : > { %4949 = vrot.lane.b32.xlu0 %v5426_v15, %s5137_s6 }
 0x13a   : > { %1722 = vrot.lane.b32.xlu0 %v5416_v12, %s5136_s28 }
 0x19e   : > { %v1356_v26 = vpop.permute.xlu1 %1355 }
 0x1a0   : > { %v4940_v16 = vpop.permute.xlu0 %4939 }
 0x1a1   : > { %v4942_v17 = vunpack.i.h.bf16 %v4940_v16  ;;  %v4941_v18 = vunpack.i.l.bf16 %v4940_v16 }
 0x1a2   : > { %v1358_v30 = vpop.permute.xlu1 %1357 }
 0x1a3   : > { %v4738_v20 = vpack.c.bf16 %v4942_v17, %v4941_v18 }
 0x1a4   : > { %v4945_v21 = vpop.permute.xlu0 %4944 }
 0x1a5   : > { %v4947_v22 = vunpack.i.h.bf16 %v4945_v21  ;;  %v4946_v23 = vunpack.i.l.bf16 %v4945_v21  ;;  %4740 = vmatprep.subr.msk.bf16.mxu1 %vm5442_vm4, %v4738_v20 }
 0x1a6   : > { %4743 = vmatpush3.bf16.xpose.msk.msra.mxu1 %vm5442_vm4, %v4738_v20  ;;  %v1721_v31 = vpop.permute.xlu1 %1720 }
 0x1a7   : > { %v4750_v24 = vpack.c.bf16 %v4947_v22, %v4946_v23 }
 0x1a8   : > { %v4950_v25 = vpop.permute.xlu0 %4949 }
 0x1a9   : > { %v4952_v27 = vunpack.i.h.bf16 %v4950_v25  ;;  %v4951_v28 = vunpack.i.l.bf16 %v4950_v25  ;;  %4752 = vmatprep.subr.msk.bf16.mxu1 %vm5442_vm4, %v4750_v24 }
 0x1ab   : > { %v4762_v29 = vpack.c.bf16 %v4952_v27, %v4951_v28 }
 0x1ac   : > { %v1723_v32 = vpop.permute.xlu0 %1722 }
 0x1ad   : > { %4531 = vmatmul.mubr.msk.f32.vlgmr.msra.gmra.mrb[2].mxu1 %vm1156_vm3, %v5416_v12 }
 0x1ae   : > { %4755 = vmatpush3.bf16.xpose.msk.msra.mxu1 %vm5442_vm4, %v4750_v24  ;;  %4544 = vmatprep.mubr.msk.f32.mxu1 %vm1156_vm3, %v1356_v26 }
 0x1af   : > { %4764 = vmatprep.subr.msk.bf16.mxu1 %vm5442_vm4, %v4762_v29 }
 0x1b5   : > { %4545 = vmatmul.mubr.msk.f32.vlgmr.msra.gmra.mrb[4].mxu1 %vm1156_vm3, %v1358_v30 }
 0x1b6   : > { %4767 = vmatpush3.bf16.xpose.msk.msra.mxu1 %vm5442_vm4, %v4762_v29  ;;  %4568 = vmatprep.mubr.msk.f32.mxu1 %vm1156_vm3, %v1721_v31 }
 0x1bd   : > { %4569 = vmatmul.mubr.msk.f32.vlgmr.msra.gmra.mrb[6].mxu1 %vm1156_vm3, %v1723_v32 }
 0x280   : > { %v4532_v33 = vpop.f32.mrb[2].mxu1 }
 0x281   : > { %v1241_v34 = vmul.f32 0.35355338, %v4532_v33  ;;  %v1231_v35 = vpop.f32.mrb[3].mxu1 }
 0x282   : > { %v1240_v36 = vmul.f32 0.35355338, %v1231_v35 }
 0x283   : > { %v1247_v37 = vsel %vm1246_vm5, %v1241_v34, -inf }
 0x284   : > { %1248 = vmax.xlane.f32.xlu0 %v1247_v37  ;;  %v1243_v38 = vsel %vm1242_vm6, %v1240_v36, -inf }
 0x285   : > { %1244 = vmax.xlane.f32.xlu1 %v1243_v38 }
 0x288   : > { %v4546_v39 = vpop.f32.mrb[4].mxu1 }
 0x289   : > { %v1447_v40 = vmul.f32 0.35355338, %v4546_v39  ;;  %v1437_v41 = vpop.f32.mrb[5].mxu1 }
 0x28a   : > { %v1446_v42 = vmul.f32 0.35355338, %v1437_v41 }
 0x28b   : > { %v1451_v43 = vsel %vm1246_vm5, %v1447_v40, -inf }
 0x28c   : > { %1452 = vmax.xlane.f32.xlu1 %v1451_v43  ;;  %v1448_v44 = vsel %vm1242_vm6, %v1446_v42, -inf }
 0x28d   : > { %1449 = vmax.xlane.f32.xlu0 %v1448_v44 }
 0x290   : > { %v4570_v45 = vpop.f32.mrb[6].mxu1 }
 0x291   : > { %v1802_v46 = vpop.f32.mrb[7].mxu1  ;;  %v1812_v4 = vmul.f32 0.35355338, %v4570_v45 }
 0x292   : > { %v1811_v3 = vmul.f32 0.35355338, %v1802_v46 }
 0x293   : > { %v1816_v6 = vsel %vm1246_vm5, %v1812_v4, -inf }
 0x294   : > { %v1813_v5 = vsel %vm1242_vm6, %v1811_v3, -inf }
 0x311   : > { %v1249_v47 = vpop.xlane.xlu0 %1248 }
 0x312   : > { %v1251_v48 = vsub.f32 %v1241_v34, %v1249_v47  ;;  %v1245_v49 = vpop.xlane.xlu1 %1244  ;;  %v1146_v47 = vld [vmem:[%s5317_s18 + $0x8] sm:$0xff] }
 0x313   : > { %v1250_v50 = vsub.f32 %v1240_v36, %v1245_v49 }
 0x314   : > { %v1254_v51 = vmul.f32 1.442695, %v1251_v48  ;;  %v1145_v48 = vld [vmem:[%s5317_s18] sm:$0xff] }
 0x315   : > { %v1252_v52 = vmul.f32 1.442695, %v1250_v50 }
 0x316   : > { %5013 = vpow2.f32 %v1254_v51 }
 0x317   : > { %5015 = vpow2.f32 %v1252_v52 }
 0x319   : > { %v1453_v53 = vpop.xlane.xlu1 %1452 }
 0x31a   : > { %v1455_v54 = vsub.f32 %v1447_v40, %v1453_v53  ;;  %v1450_v55 = vpop.xlane.xlu0 %1449 }
 0x31b   : > { %v1454_v56 = vsub.f32 %v1446_v42, %v1450_v55 }
 0x31c   : > { %v1458_v57 = vmul.f32 1.442695, %v1455_v54 }
 0x31d   : > { %v1456_v58 = vmul.f32 1.442695, %v1454_v56 }
 0x31e   : > { %5017 = vpow2.f32 %v1458_v57 }
 0x31f   : > { %5019 = vpow2.f32 %v1456_v58 }
 0x320   : > { %v5468_v59 = vpop.eup %5013 }
 0x321   : > { %v5016_v60 = vpop.eup %5015  ;;  %v1259_v61 = vsel %vm1246_vm5, %v5468_v59, 0.0 }
 0x322   : > { %1260 = vadd.xlane.f32.xlu1 %v1259_v61  ;;  %v1256_v62 = vsel %vm1242_vm6, %v5016_v60, 0.0 }
 0x323   : > { %1257 = vadd.xlane.f32.xlu0 %v1256_v62 }
 0x328   : > { %v5473_v63 = vpop.eup %5017 }
 0x329   : > { %v5020_v0 = vpop.eup %5019  ;;  %v1463_v1 = vsel %vm1246_vm5, %v5473_v63, 0.0 }
 0x32a   : > { %1464 = vadd.xlane.f32.xlu1 %v1463_v1  ;;  %v1460_v2 = vsel %vm1242_vm6, %v5020_v0, 0.0 }
 0x32b   : > { %1461 = vadd.xlane.f32.xlu0 %v1460_v2 }
 0x33b   : > { %4959 = vrot.lane.b32.xlu1 %v5426_v15, %s5138_s25 }
 0x33f   : > { %4964 = vrot.lane.b32.xlu1 %v5426_v15, %s5139_s27 }
 0x341   : > { %4954 = vrot.lane.b32.xlu0 %v5426_v15, %s5140_s30  ;;  %s5878_s30 = scalar_lea.vmem %s5793_s7, %s5294_s1 }
 0x343   : > { %2008 = vrot.lane.b32.xlu1 %v5416_v12, %s5141_s29 }
 0x345   : > { %2006 = vrot.lane.b32.xlu0 %v5418_v14, %s5141_s29 }
 0x364   : > { %1814 = vmax.xlane.f32.xlu0 %v1813_v5 }
 0x367   : > { %1817 = vmax.xlane.f32.xlu1 %v1816_v6 }
 0x378   : > { %4969 = vrot.lane.b32.xlu1 %v5426_v15, %s5142_s21 }
 0x37c   : > { %4974 = vrot.lane.b32.xlu1 %v5426_v15, %s5143_s22 }
 0x3af   : > { %v1261_v10 = vpop.xlane.xlu1 %1260 }
 0x3b0   : > { %v1258_v8 = vpop.xlane.xlu0 %1257 }
 0x3b1   : > { %5021 = vrcp.f32 %v1258_v8 }
 0x3b2   : > { %5023 = vrcp.f32 %v1261_v10 }
 0x3b7   : > { %v1465_v11 = vpop.xlane.xlu1 %1464 }
 0x3b8   : > { %v1462_v12 = vpop.xlane.xlu0 %1461 }
 0x3b9   : > { %5025 = vrcp.f32 %v1462_v12 }
 0x3ba   : > { %5027 = vrcp.f32 %v1465_v11 }
 0x3bb   : > { %v5022_v13 = vpop.eup %5021  ;;  %v4960_v14 = vpop.permute.xlu1 %4959 }
 0x3bc   : > { %v4955_v16 = vpop.permute.xlu0 %4954  ;;  %v1264_v17 = vmul.f32 %v5022_v13, %v5016_v60  ;;  %v4962_v18 = vunpack.i.h.bf16 %v4960_v14  ;;  %v4961_v20 = vunpack.i.l.bf16 %v4960_v14  ;;  %v5024_v25 = vpop.eup %5023 }
 0x3bd   : > { %v4957_v21 = vunpack.i.h.bf16 %v4955_v16  ;;  %v4956_v22 = vunpack.i.l.bf16 %v4955_v16  ;;  %v1265_v32 = vmul.f32 %v5024_v25, %v5468_v59 }
 0x3be   : > { %4537 = vmatprep.mubr.msk.f32.mxu0 %vm1242_vm6, %v1264_v17  ;;  %v4756_v29 = vpack.c.bf16 %v4962_v18, %v4961_v20 }
 0x3bf   : > { %v4965_v23 = vpop.permute.xlu1 %4964  ;;  %v4744_v24 = vpack.c.bf16 %v4957_v21, %v4956_v22 }
 0x3c0   : > { %v4967_v26 = vunpack.i.h.bf16 %v4965_v23  ;;  %v4966_v27 = vunpack.i.l.bf16 %v4965_v23  ;;  %v2007_v28 = vpop.permute.xlu0 %2006 }
 0x3c1   : > { %4746 = vmatprep.subr.msk.bf16.mxu0 %vm5491_vm9, %v4744_v24  ;;  %4587 = vmatprep.mubr.msk.f32.mxu1 %vm1156_vm3, %v2007_v28 }
 0x3c2   : > { %v4774_v30 = vpack.c.bf16 %v4967_v26, %v4966_v27  ;;  %4749 = vmatpush3.bf16.msk.msra.mxu0 %vm5491_vm9, %v4744_v24  ;;  %v1148_v26 = vld [vmem:[%s5317_s18 + $0x18] sm:$0xff] }
 0x3c3   : > { %v5026_v31 = vpop.eup %5025  ;;  %4758 = vmatprep.subr.msk.bf16.mxu0 %vm5491_vm9, %v4756_v29  ;;  %v2009_v36 = vpop.permute.xlu1 %2008 }
 0x3c4   : > { %v5028_v33 = vpop.eup %5027  ;;  %4776 = vmatprep.subr.msk.bf16.mxu1 %vm5442_vm4, %v4774_v30  ;;  %v1468_v34 = vmul.f32 %v5026_v31, %v5020_v0 }
 0x3c5   : > { %4538 = vmatmul.mubr.msk.f32.vlgmr.msra.gmra.mrb[0].mxu0 %vm1242_vm6, %v1265_v32  ;;  %4779 = vmatpush3.bf16.xpose.msk.msra.mxu1 %vm5442_vm4, %v4774_v30  ;;  %v1469_v35 = vmul.f32 %v5028_v33, %v5473_v63 }
 0x3c6   : > { %4761 = vmatpush3.bf16.msk.msra.mxu0 %vm5491_vm9, %v4756_v29  ;;  %4551 = vmatprep.mubr.msk.f32.mxu0 %vm1242_vm6, %v1468_v34 }
 0x3c7   : > { %4554 = vmatprep.subr.mxu0 %v1146_v47 }
 0x3c9   : > { %4552 = vmatmul.mubr.msk.f32.vlgmr.msra.gmra.mrb[2].mxu0 %vm1242_vm6, %v1469_v35  ;;  %v4324_v35 = vld [vmem:[%s5874_s8] ss:$0 sm:$0xff]  ;;  %s5880_s8 = scalar_lea.vmem %s5795_s9, %s5294_s1 }
 0x3ca   : > { %4555 = vmatpush3.msra.mxu0 %v1146_v47 }
 0x3cb   : > { %4559 = vmatprep.subr.mxu0 %v1145_v48 }
 0x3cc   : > { %4588 = vmatmul.mubr.msk.f32.vlgmr.msra.gmra.mrb[8].mxu1 %vm1156_vm3, %v2009_v36 }
 0x3f1   : > { %v1815_v37 = vpop.xlane.xlu0 %1814 }
 0x3f2   : > { %v1819_v38 = vsub.f32 %v1811_v3, %v1815_v37  ;;  %v1147_v3 = vld [vmem:[%s5317_s18 + $0x10] sm:$0xff]  ;;  %s5879_s18 = scalar_lea.vmem %s5797_s11, %s5294_s1 }
 0x3f4   : > { %v1821_v39 = vmul.f32 1.442695, %v1819_v38  ;;  %v1818_v40 = vpop.xlane.xlu1 %1817 }
 0x3f5   : > { %v1820_v41 = vsub.f32 %v1812_v4, %v1818_v40 }
 0x3f6   : > { %5029 = vpow2.f32 %v1821_v39 }
 0x3f7   : > { %v1823_v42 = vmul.f32 1.442695, %v1820_v41 }
 0x3f8   : > { %v4970_v50 = vpop.permute.xlu1 %4969 }
 0x3f9   : > { %5031 = vpow2.f32 %v1823_v42  ;;  %v4972_v54 = vunpack.i.h.bf16 %v4970_v50  ;;  %v4971_v55 = vunpack.i.l.bf16 %v4970_v50 }
 0x3fb   : > { %v4768_v58 = vpack.c.bf16 %v4972_v54, %v4971_v55  ;;  %v2442_v55 = vld [vmem:[%s5343_s17 + $0x10] sm:$0xff] }
 0x3fc   : > { %v4975_v1 = vpop.permute.xlu1 %4974 }
 0x3fd   : > { %v4977_v4 = vunpack.i.h.bf16 %v4975_v1  ;;  %v4976_v5 = vunpack.i.l.bf16 %v4975_v1 }
 0x3ff   : > { %v4780_v11 = vpack.c.bf16 %v4977_v4, %v4976_v5 }
 0x400   : > { %v5030_v43 = vpop.eup %5029 }
 0x401   : > { %v1825_v44 = vsel %vm1242_vm6, %v5030_v43, 0.0 }
 0x402   : > { %1826 = vadd.xlane.f32.xlu0 %v1825_v44 }
 0x403   : > { %v5032_v45 = vpop.eup %5031 }
 0x404   : > { %v1828_v46 = vsel %vm1246_vm5, %v5032_v45, 0.0 }
 0x406   : > { %1829 = vadd.xlane.f32.xlu0 %v1828_v46 }
 0x48f   : > { %v1827_v49 = vpop.xlane.xlu0 %1826 }
 0x490   : > { %5033 = vrcp.f32 %v1827_v49 }
 0x493   : > { %v1830_v52 = vpop.xlane.xlu0 %1829 }
 0x494   : > { %5035 = vrcp.f32 %v1830_v52  ;;  %v2440_v52 = vld [vmem:[%s5343_s17] sm:$0xff] }
 0x498   : > { %v4539_v51 = vpop.f32.mrb[0].mxu0 }
 0x499   : > { %v1346_v53 = vpop.f32.mrb[1].mxu0 }
 0x49a   : > { %v5034_v0 = vpop.eup %5033 }
 0x49b   : > { %v1833_v8 = vmul.f32 %v5034_v0, %v5030_v43  ;;  %v2351_v0 = vld [vmem:[%s5334_s24 + $0x18] sm:$0xff] }
 0x49c   : > { %v4553_v56 = vpop.f32.mrb[2].mxu0 }
 0x49d   : > { %v1549_v57 = vpop.f32.mrb[3].mxu0 }
 0x49e   : > { %4556 = vmatprep.mubr.msk.f32.mxu0 %vm1156_vm3, %v1549_v57  ;;  %v5036_v2 = vpop.eup %5035 }
 0x49f   : > { %4557 = vmatmul.mubr.msk.f32.vlgmr.msra.gmra.mrb[4].mxu0 %vm1156_vm3, %v4553_v56  ;;  %v4589_v59 = vpop.f32.mrb[8].mxu1  ;;  %v1834_v10 = vmul.f32 %v5036_v2, %v5032_v45  ;;  %v2443_v56 = vld [vmem:[%s5343_s17 + $0x18] sm:$0xff] }
 0x4a0   : > { %4560 = vmatpush3.msra.mxu0 %v1145_v48  ;;  %4561 = vmatprep.mubr.msk.f32.mxu0 %vm1156_vm3, %v1346_v53  ;;  %v2088_v60 = vpop.f32.mrb[9].mxu1  ;;  %v2098_v62 = vmul.f32 0.35355338, %v4589_v59  ;;  %v2441_v53 = vld [vmem:[%s5343_s17 + $0x8] sm:$0xff]  ;;  %v4798_v57 = vpack.c.bf16 %v2443_v56, %v2442_v55 }
 0x4a1   : > { %4770 = vmatprep.subr.msk.bf16.mxu0 %vm5491_vm9, %v4768_v58  ;;  %v2097_v61 = vmul.f32 0.35355338, %v2088_v60  ;;  %v4794_v54 = vpack.c.bf16 %v2441_v53, %v2440_v52  ;;  %v1051_v59 = vld [vmem:[%s5875_s15 + $0x8] sm:$0x1]  ;;  %v2348_v60 = vld [vmem:[%s5334_s24] sm:$0xff] }
 0x4a2   : > { %v2102_v6 = vsel %vm1246_vm5, %v2098_v62, -inf }
 0x4a3   : > { %v2099_v63 = vsel %vm1242_vm6, %v2097_v61, -inf }
 0x4a4   : > { %2100 = vmax.xlane.f32.xlu0 %v2099_v63  ;;  %v2350_v63 = vld [vmem:[%s5334_s24 + $0x10] sm:$0xff] }
 0x4a5   : > { %v4790_v1 = vpack.c.bf16 %v2351_v0, %v2350_v63 }
 0x4a7   : > { %4562 = vmatmul.mubr.msk.f32.vlgmr.msra.gmra.mrb[4].mxu0 %vm1156_vm3, %v4539_v51 }
 0x4a8   : > { %4773 = vmatpush3.bf16.msk.msra.mxu0 %vm5491_vm9, %v4768_v58  ;;  %2103 = vmax.xlane.f32.xlu0 %v2102_v6  ;;  %v1050_v58 = vld [vmem:[%s5875_s15] sm:$0xff]  ;;  %s5884_s15 = sld [smem:[#allocation23_spill]] }
 0x4a9   : > { %4575 = vmatprep.mubr.msk.f32.mxu0 %vm1242_vm6, %v1833_v8  ;;  %4578 = vmatprep.subr.mxu0 %v1147_v3 }
 0x4ab   : > { %4576 = vmatmul.mubr.msk.f32.vlgmr.msra.gmra.mrb[6].mxu0 %vm1242_vm6, %v1834_v10 }
 0x4ac   : > { %4579 = vmatpush3.msra.mxu0 %v1147_v3 }
 0x4ad   : > { %4782 = vmatprep.subr.msk.bf16.mxu0 %vm5491_vm9, %v4780_v11 }
 0x531   : > { %v2101_v12 = vpop.xlane.xlu0 %2100 }
 0x532   : > { %v2105_v13 = vsub.f32 %v2097_v61, %v2101_v12  ;;  %v2349_v61 = vld [vmem:[%s5334_s24 + $0x8] sm:$0xff] }
 0x534   : > { %v2107_v14 = vmul.f32 1.442695, %v2105_v13  ;;  %v4326_v13 = vld [vmem:[%s5878_s30] ss:$0 sm:$0xff]  ;;  %s5888_s30 = sld [smem:[#allocation26_spill]] }
 0x535   : > { %v2104_v16 = vpop.xlane.xlu0 %2103 }
 0x536   : > { %5037 = vpow2.f32 %v2107_v14  ;;  %v2106_v17 = vsub.f32 %v2098_v62, %v2104_v16  ;;  %v4786_v62 = vpack.c.bf16 %v2349_v61, %v2348_v60 }
 0x538   : > { %v2109_v18 = vmul.f32 1.442695, %v2106_v17  ;;  %4787 = vmatprep.subr.bf16.mxu1 %v4786_v62 }
 0x539   : > { %4789 = vmatpush3.bf16.msra.mxu1 %v4786_v62 }
 0x53a   : > { %5039 = vpow2.f32 %v2109_v18  ;;  %4791 = vmatprep.subr.bf16.mxu1 %v4790_v1  ;;  %s5889_s21 = scalar_lea.vmem %s5888_s30, %s5294_s1 }
 0x53d   : > { %4793 = vmatpush3.bf16.msra.mxu1 %v4790_v1 }
 0x540   : > { %v5038_v20 = vpop.eup %5037 }
 0x541   : > { %v2111_v21 = vsel %vm1242_vm6, %v5038_v20, 0.0 }
 0x542   : > { %2112 = vadd.xlane.f32.xlu0 %v2111_v21 }
 0x544   : > { %v5040_v22 = vpop.eup %5039 }
 0x545   : > { %v2114_v23 = vsel %vm1246_vm5, %v5040_v22, 0.0 }
 0x546   : > { %2115 = vadd.xlane.f32.xlu0 %v2114_v23 }
 0x57e   : > { %v4577_v24 = vpop.f32.mrb[6].mxu0 }
 0x57f   : > { %v1914_v25 = vpop.f32.mrb[7].mxu0 }
 0x580   : > { %4580 = vmatprep.mubr.msk.f32.mxu0 %vm1156_vm3, %v1914_v25 }
 0x581   : > { %4581 = vmatmul.mubr.msk.f32.vlgmr.msra.gmra.mrb[4].mxu0 %vm1156_vm3, %v4577_v24 }
 0x582   : > { %4785 = vmatpush3.bf16.msk.msra.mxu0 %vm5491_vm9, %v4780_v11  ;;  %v4325_v11 = vld [vmem:[%s5877_s5] ss:$0 sm:$0xff]  ;;  %s5887_s5 = scalar_lea.vmem %s5886_s0, %s5294_s1 }
 0x583   : > { %4597 = vmatprep.subr.mxu0 %v1148_v26 }
 0x5cf   : > { %v2113_v27 = vpop.xlane.xlu0 %2112 }
 0x5d0   : > { %5041 = vrcp.f32 %v2113_v27 }
 0x5d3   : > { %v2116_v28 = vpop.xlane.xlu0 %2115 }
 0x5d4   : > { %5043 = vrcp.f32 %v2116_v28 }
 0x5da   : > { %v5042_v29 = vpop.eup %5041 }
 0x5db   : > { %v2119_v30 = vmul.f32 %v5042_v29, %v5038_v20 }
 0x5dd   : > { %4594 = vmatprep.mubr.msk.f32.mxu0 %vm1242_vm6, %v2119_v30 }
 0x5de   : > { %v5044_v31 = vpop.eup %5043 }
 0x5df   : > { %v2120_v32 = vmul.f32 %v5044_v31, %v5040_v22  ;;  %v4330_v22 = vld [vmem:[%s5879_s18] ss:$0 sm:$0xff] }
 0x5e1   : > { %4595 = vmatmul.mubr.msk.f32.vlgmr.msra.gmra.mrb[8].mxu0 %vm1242_vm6, %v2120_v32 }
 0x5e2   : > { %4598 = vmatpush3.msra.mxu0 %v1148_v26 }
 0x5e3   : > { %4795 = vmatprep.subr.bf16.mxu0 %v4794_v54 }
 0x6b4   : > { %v4596_v33 = vpop.f32.mrb[8].mxu0 }
 0x6b5   : > { %v2200_v34 = vpop.f32.mrb[9].mxu0 }
 0x6b6   : > { %4599 = vmatprep.mubr.msk.f32.mxu0 %vm1156_vm3, %v2200_v34  ;;  %v4327_v34 = vld [vmem:[%s5880_s8] ss:$0 sm:$0xff] }
 0x6b7   : > { %4600 = vmatmul.mubr.msk.f32.vlgmr.msra.gmra.mrb[4].mxu0 %vm1156_vm3, %v4596_v33 }
 0x6b8   : > { %4797 = vmatpush3.bf16.msra.mxu0 %v4794_v54  ;;  %4621 = vmatprep.mubr.msk.f32.mxu0 %vm1063_vm2, %v1050_v58 }
 0x6b9   : > { %4799 = vmatprep.subr.bf16.mxu0 %v4798_v57 }
 0x6bc   : > { %4801 = vmatpush3.bf16.msra.mxu0 %v4798_v57 }
 0x6bf   : > { %4622 = vmatmul.mubr.msk.f32.vlgmr.msra.gmra.mrb[10].mxu0 %vm1063_vm2, %v1051_v59 }
 0x78a   : > { %v4601_v36 = vpop.f32.mrb[4].mxu0 }
 0x78b   : > { %v2299_v37 = vadd.f32 %v4601_v36, %v4324_v35  ;;  %v2281_v38 = vpop.f32.mrb[5].mxu0 }
 0x78c   : > { %v2298_v39 = vadd.f32 %v4324_v35, %v2281_v38 }
 0x78d   : > { %v2301_v40 = vadd.f32 %v2299_v37, %v5407_v9 }
 0x78e   : > { %v2300_v41 = vadd.f32 %v2298_v39, %v5403_v7 }
 0x78f   : > { %v2308_v42 = vsel %vm2307_vm10, %v2301_v40, 0.0 }
 0x790   : > { %2309 = vadd.xlane.f32.xlu1 %v2308_v42  ;;  %v2304_v43 = vsel %vm1063_vm2, %v2300_v41, 0.0 }
 0x791   : > { %2305 = vadd.xlane.f32.xlu0 %v2304_v43 }
 0x792   : > { %v4623_v23 = vpop.f32.mrb[10].mxu0 }
 0x793   : > { %v2529_v24 = vadd.f32 %v4623_v23, %v4330_v22  ;;  %v2523_v25 = vpop.f32.mrb[11].mxu0 }
 0x794   : > { %v2524_v26 = vadd.f32 %v4330_v22, %v2523_v25 }
 0x796   : > { %v5590_v27 = vpack.i.bf16 %v2529_v24, %v2524_v26  ;;  %v4802_v28 = vpack.c.bf16 %v2529_v24, %v2524_v26 }
 0x798   : > { %4804 = vmatprep.subr.msk.bf16.mxu1 %vm5442_vm4, %v4802_v28 }
 0x7a1   : > { %4984 = vrot.lane.b32.xlu1 %v5590_v27, %s5136_s28 }
 0x81d   : > { %v2310_v44 = vpop.xlane.xlu1 %2309 }
 0x81e   : > { %v2313_v45 = vmul.f32 0.03125, %v2310_v44  ;;  %v2306_v46 = vpop.xlane.xlu0 %2305 }
 0x81f   : > { %v2312_v47 = vmul.f32 0.03125, %v2306_v46 }
 0x820   : > { %v2315_v48 = vsub.f32 %v2301_v40, %v2313_v45 }
 0x821   : > { %v2314_v49 = vsub.f32 %v2300_v41, %v2312_v47  ;;  %v4985_v33 = vpop.permute.xlu1 %4984 }
 0x822   : > { %v2317_v9 = vmul.f32 %v2315_v48, %v2315_v48  ;;  %v4987_v35 = vunpack.i.h.bf16 %v4985_v33  ;;  %v4986_v36 = vunpack.i.l.bf16 %v4985_v33 }
 0x823   : > { %v2316_v50 = vmul.f32 %v2314_v49, %v2314_v49 }
 0x824   : > { %v2321_v51 = vsel %vm2307_vm10, %v2317_v9, 0.0  ;;  %v4826_v41 = vpack.c.bf16 %v4987_v35, %v4986_v36 }
 0x825   : > { %v2318_v7 = vsel %vm1063_vm2, %v2316_v50, 0.0 }
 0x826   : > { %2319 = vadd.xlane.f32.xlu0 %v2318_v7 }
 0x82a   : > { %2322 = vadd.xlane.f32.xlu0 %v2321_v51 }
 0x840   : > { %4979 = vrot.lane.b32.xlu0 %v5590_v27, %s5133_s26 }
 0x8b3   : > { %v2320_v2 = vpop.xlane.xlu0 %2319 }
 0x8b4   : > { %v2324_v3 = vmul.f32 0.03125, %v2320_v2 }
 0x8b6   : > { %v2326_v4 = vadd.f32 1e-05, %v2324_v3 }
 0x8b7   : > { %v2323_v5 = vpop.xlane.xlu0 %2322 }
 0x8b8   : > { %5045 = vrsqrt.f32 %v2326_v4  ;;  %v2325_v6 = vmul.f32 0.03125, %v2323_v5 }
 0x8ba   : > { %v2327_v8 = vadd.f32 1e-05, %v2325_v6 }
 0x8bb   : > { %v4980_v29 = vpop.permute.xlu0 %4979 }
 0x8bc   : > { %5047 = vrsqrt.f32 %v2327_v8  ;;  %v4982_v30 = vunpack.i.h.bf16 %v4980_v29  ;;  %v4981_v31 = vunpack.i.l.bf16 %v4980_v29 }
 0x8be   : > { %v4814_v32 = vpack.c.bf16 %v4982_v30, %v4981_v31 }
 0x8c2   : > { %v5046_v10 = vpop.eup %5045 }
 0x8c3   : > { %v2330_v12 = vmul.f32 %v5046_v10, %v2314_v49 }
 0x8c5   : > { %v2338_v14 = vmul.f32 %v4325_v11, %v2330_v12 }
 0x8c6   : > { %v5048_v16 = vpop.eup %5047 }
 0x8c7   : > { %v2331_v17 = vmul.f32 %v5048_v16, %v2315_v48  ;;  %v5577_v18 = vadd.f32 %v4326_v13, %v2338_v14 }
 0x8c9   : > { %v2339_v20 = vmul.f32 %v4325_v11, %v2331_v17  ;;  %4610 = vmatprep.mubr.msk.f32.mxu1 %vm1063_vm2, %v5577_v18 }
 0x8cb   : > { %v5581_v21 = vadd.f32 %v4326_v13, %v2339_v20 }
 0x8cd   : > { %4611 = vmatmul.mubr.msk.f32.vlgmr.msra.gmra.mrb[10].mxu1 %vm1063_vm2, %v5581_v21 }
 0x8ce   : > { %4807 = vmatpush3.bf16.xpose.msk.msra.mxu1 %vm5442_vm4, %v4802_v28 }
 0x8cf   : > { %4816 = vmatprep.subr.msk.bf16.mxu1 %vm5442_vm4, %v4814_v32 }
 0x9a0   : > { %v4612_v37 = vpop.f32.mrb[10].mxu1 }
 0x9a1   : > { %v2431_v38 = vpop.f32.mrb[11].mxu1  ;;  %v5609_v40 = vadd.f32 %v4612_v37, %v4327_v34 }
 0x9a2   : > { %v5607_v39 = vadd.f32 %v4327_v34, %v2431_v38 }
 0x9a4   : > { %2736 = vrot.lane.b32.xlu0 %v5607_v39, %s5133_s26  ;;  %4628 = vmatprep.mubr.msk.f32.mxu1 %vm1156_vm3, %v5607_v39 }
 0x9a5   : > { %4629 = vmatmul.mubr.msk.f32.vlgmr.msra.gmra.mrb[12].mxu1 %vm1156_vm3, %v5609_v40 }
 0x9a6   : > { %4819 = vmatpush3.bf16.xpose.msk.msra.mxu1 %vm5442_vm4, %v4814_v32 }
 0x9a7   : > { %4828 = vmatprep.subr.msk.bf16.mxu1 %vm5442_vm4, %v4826_v41 }
 0x9a8   : > { %2738 = vrot.lane.b32.xlu0 %v5609_v40, %s5133_s26  ;;  %s5881_s26 = sld [smem:[#allocation11_spill]] }
 0x9ac   : > { %3101 = vrot.lane.b32.xlu0 %v5607_v39, %s5136_s28 }
 0x9b0   : > { %3103 = vrot.lane.b32.xlu0 %v5609_v40, %s5136_s28  ;;  %s5882_s28 = sld [smem:[#allocation22_spill]] }
 0xa16   : > { %v2737_v42 = vpop.permute.xlu0 %2736 }
 0xa17   : > { %4642 = vmatprep.mubr.msk.f32.mxu1 %vm1156_vm3, %v2737_v42 }
 0xa1a   : > { %v2739_v43 = vpop.permute.xlu0 %2738 }
 0xa1b   : > { %4643 = vmatmul.mubr.msk.f32.vlgmr.msra.gmra.mrb[14].mxu1 %vm1156_vm3, %v2739_v43 }
 0xa1c   : > { %4831 = vmatpush3.bf16.xpose.msk.msra.mxu1 %vm5442_vm4, %v4826_v41 }
 0xa1e   : > { %v3102_v44 = vpop.permute.xlu0 %3101 }
 0xa1f   : > { %4666 = vmatprep.mubr.msk.f32.mxu1 %vm1156_vm3, %v3102_v44 }
 0xa22   : > { %v3104_v45 = vpop.permute.xlu0 %3103 }
 0xa23   : > { %4667 = vmatmul.mubr.msk.f32.vlgmr.msra.gmra.mrb[16].mxu1 %vm1156_vm3, %v3104_v45 }
 0xa78   : > { %v4630_v46 = vpop.f32.mrb[12].mxu1 }
 0xa79   : > { %v2625_v47 = vmul.f32 0.35355338, %v4630_v46  ;;  %v2615_v48 = vpop.f32.mrb[13].mxu1 }
 0xa7a   : > { %v2624_v49 = vmul.f32 0.35355338, %v2615_v48 }
 0xa7b   : > { %v2629_v50 = vsel %vm1246_vm5, %v2625_v47, -inf }
 0xa7c   : > { %2630 = vmax.xlane.f32.xlu1 %v2629_v50  ;;  %v2626_v7 = vsel %vm1242_vm6, %v2624_v49, -inf }
 0xa7d   : > { %2627 = vmax.xlane.f32.xlu0 %v2626_v7 }
 0xaee   : > { %v4644_v9 = vpop.f32.mrb[14].mxu1 }
 0xaef   : > { %v2818_v51 = vpop.f32.mrb[15].mxu1  ;;  %v2828_v53 = vmul.f32 0.35355338, %v4644_v9 }
 0xaf0   : > { %v2827_v52 = vmul.f32 0.35355338, %v2818_v51 }
 0xaf1   : > { %v2832_v56 = vsel %vm1246_vm5, %v2828_v53, -inf }
 0xaf2   : > { %v2829_v54 = vsel %vm1242_vm6, %v2827_v52, -inf }
 0xaf3   : > { %2830 = vmax.xlane.f32.xlu0 %v2829_v54 }
 0xaf6   : > { %v4668_v55 = vpop.f32.mrb[16].mxu1 }
 0xaf7   : > { %v3183_v57 = vpop.f32.mrb[17].mxu1  ;;  %2833 = vmax.xlane.f32.xlu0 %v2832_v56  ;;  %v3193_v25 = vmul.f32 0.35355338, %v4668_v55 }
 0xaf8   : > { %v3192_v23 = vmul.f32 0.35355338, %v3183_v57  ;;  %v2533_v57 = vld [vmem:[%s5881_s26 + $0x8] sm:$0xff] }
 0xaf9   : > { %v3197_v26 = vsel %vm1246_vm5, %v3193_v25, -inf }
 0xafa   : > { %v3194_v24 = vsel %vm1242_vm6, %v3192_v23, -inf }
 0xb09   : > { %v2631_v58 = vpop.xlane.xlu1 %2630 }
 0xb0a   : > { %v2633_v59 = vsub.f32 %v2625_v47, %v2631_v58  ;;  %v2628_v60 = vpop.xlane.xlu0 %2627  ;;  %v2532_v58 = vld [vmem:[%s5881_s26] sm:$0xff] }
 0xb0b   : > { %v2632_v61 = vsub.f32 %v2624_v49, %v2628_v60 }
 0xb0c   : > { %v2636_v62 = vmul.f32 1.442695, %v2633_v59 }
 0xb0d   : > { %v2634_v63 = vmul.f32 1.442695, %v2632_v61 }
 0xb0e   : > { %5049 = vpow2.f32 %v2636_v62 }
 0xb0f   : > { %5051 = vpow2.f32 %v2634_v63 }
 0xb18   : > { %v5050_v0 = vpop.eup %5049 }
 0xb19   : > { %v5052_v1 = vpop.eup %5051  ;;  %v2641_v2 = vsel %vm1246_vm5, %v5050_v0, 0.0 }
 0xb1a   : > { %2642 = vadd.xlane.f32.xlu1 %v2641_v2  ;;  %v2638_v3 = vsel %vm1242_vm6, %v5052_v1, 0.0 }
 0xb1b   : > { %2639 = vadd.xlane.f32.xlu0 %v2638_v3 }
 0xb80   : > { %v2831_v4 = vpop.xlane.xlu0 %2830 }
 0xb81   : > { %v2835_v5 = vsub.f32 %v2827_v52, %v2831_v4 }
 0xb83   : > { %v2837_v6 = vmul.f32 1.442695, %v2835_v5 }
 0xb84   : > { %v2834_v8 = vpop.xlane.xlu0 %2833 }
 0xb85   : > { %5053 = vpow2.f32 %v2837_v6  ;;  %v2836_v10 = vsub.f32 %v2828_v53, %v2834_v8 }
 0xb87   : > { %v2839_v11 = vmul.f32 1.442695, %v2836_v10 }
 0xb89   : > { %5055 = vpow2.f32 %v2839_v11 }
 0xb8f   : > { %v5054_v12 = vpop.eup %5053 }
 0xb90   : > { %v2841_v13 = vsel %vm1242_vm6, %v5054_v12, 0.0 }
 0xb91   : > { %2842 = vadd.xlane.f32.xlu0 %v2841_v13 }
 0xb93   : > { %v5056_v14 = vpop.eup %5055 }
 0xb94   : > { %v2844_v16 = vsel %vm1246_vm5, %v5056_v14, 0.0 }
 0xb95   : > { %2845 = vadd.xlane.f32.xlu1 %v2844_v16 }
 0xba6   : > { %4994 = vrot.lane.b32.xlu1 %v5590_v27, %s5135_s2  ;;  %s5893_s2 = sld [smem:[#allocation3_spill]] }
 0xba7   : > { %4989 = vrot.lane.b32.xlu0 %v5590_v27, %s5134_s3  ;;  %v2643_v28 = vpop.xlane.xlu1 %2642 }
 0xba8   : > { %v2640_v17 = vpop.xlane.xlu0 %2639 }
 0xba9   : > { %5057 = vrcp.f32 %v2640_v17 }
 0xbaa   : > { %4999 = vrot.lane.b32.xlu1 %v5590_v27, %s5141_s29  ;;  %5059 = vrcp.f32 %v2643_v28 }
 0xbab   : > { %3387 = vrot.lane.b32.xlu0 %v5607_v39, %s5141_s29 }
 0xbac   : > { %p4380_p8 = scmp.ne.s32.totalorder %s5893_s2, 1 }
 0xbae   : > { %3389 = vrot.lane.b32.xlu1 %v5609_v40, %s5141_s29 }
 0xbb3   : > { %v5058_v20 = vpop.eup %5057 }
 0xbb4   : > { %v2646_v22 = vmul.f32 %v5058_v20, %v5052_v1  ;;  %v5060_v35 = vpop.eup %5059 }
 0xbb5   : > { %v2647_v40 = vmul.f32 %v5060_v35, %v5050_v0 }
 0xbb6   : > { %4635 = vmatprep.mubr.msk.f32.mxu0 %vm1242_vm6, %v2646_v22 }
 0xbca   : > { %3195 = vmax.xlane.f32.xlu0 %v3194_v24 }
 0xbd2   : > { %3198 = vmax.xlane.f32.xlu1 %v3197_v26 }
 0xbe3   : > { %5004 = vrot.lane.b32.xlu1 %v5590_v27, %s5137_s6  ;;  %s5883_s6 = scalar_lea.vmem %s5882_s28, %s5294_s1 }
 0xbe4   : > { %v4369_v15 = vld [vmem:[%s5883_s6] ss:$0 sm:$0xff] }
 0xbe7   : > { %5009 = vrot.lane.b32.xlu1 %v5590_v27, %s5139_s27 }
 0xc1e   : > { %v2843_v29 = vpop.xlane.xlu0 %2842 }
 0xc1f   : > { %5061 = vrcp.f32 %v2843_v29 }
 0xc22   : > { %v2846_v30 = vpop.xlane.xlu1 %2845  ;;  %v4990_v31 = vpop.permute.xlu0 %4989 }
 0xc23   : > { %5063 = vrcp.f32 %v2846_v30  ;;  %v4992_v32 = vunpack.i.h.bf16 %v4990_v31  ;;  %v4991_v33 = vunpack.i.l.bf16 %v4990_v31 }
 0xc25   : > { %v4808_v34 = vpack.c.bf16 %v4992_v32, %v4991_v33 }
 0xc26   : > { %v4995_v36 = vpop.permute.xlu1 %4994  ;;  %v3388_v37 = vpop.permute.xlu0 %3387 }
 0xc27   : > { %v4997_v38 = vunpack.i.h.bf16 %v4995_v36  ;;  %v4996_v39 = vunpack.i.l.bf16 %v4995_v36  ;;  %4810 = vmatprep.subr.msk.bf16.mxu0 %vm5491_vm9, %v4808_v34  ;;  %4685 = vmatprep.mubr.msk.f32.mxu1 %vm1156_vm3, %v3388_v37 }
 0xc28   : > { %4813 = vmatpush3.bf16.msk.msra.mxu0 %vm5491_vm9, %v4808_v34 }
 0xc29   : > { %v5062_v27 = vpop.eup %5061  ;;  %v4820_v41 = vpack.c.bf16 %v4997_v38, %v4996_v39  ;;  %v2535_v39 = vld [vmem:[%s5881_s26 + $0x18] sm:$0xff] }
 0xc2a   : > { %v5000_v42 = vpop.permute.xlu1 %4999  ;;  %v2849_v43 = vmul.f32 %v5062_v27, %v5054_v12 }
 0xc2b   : > { %v5002_v44 = vunpack.i.h.bf16 %v5000_v42  ;;  %v5001_v45 = vunpack.i.l.bf16 %v5000_v42  ;;  %4636 = vmatmul.mubr.msk.f32.vlgmr.msra.gmra.mrb[12].mxu0 %vm1242_vm6, %v2647_v40  ;;  %4822 = vmatprep.subr.msk.bf16.mxu0 %vm5491_vm9, %v4820_v41 }
 0xc2c   : > { %4825 = vmatpush3.bf16.msk.msra.mxu0 %vm5491_vm9, %v4820_v41  ;;  %4649 = vmatprep.mubr.msk.f32.mxu0 %vm1242_vm6, %v2849_v43 }
 0xc2d   : > { %v5064_v46 = vpop.eup %5063  ;;  %v4838_v47 = vpack.c.bf16 %v5002_v44, %v5001_v45  ;;  %4652 = vmatprep.subr.mxu0 %v2533_v57 }
 0xc2e   : > { %v2850_v48 = vmul.f32 %v5064_v46, %v5056_v14  ;;  %v3390_v49 = vpop.permute.xlu1 %3389  ;;  %v2534_v14 = vld [vmem:[%s5881_s26 + $0x10] sm:$0xff] }
 0xc2f   : > { %4840 = vmatprep.subr.msk.bf16.mxu1 %vm5442_vm4, %v4838_v47 }
 0xc30   : > { %4650 = vmatmul.mubr.msk.f32.vlgmr.msra.gmra.mrb[14].mxu0 %vm1242_vm6, %v2850_v48  ;;  %4843 = vmatpush3.bf16.xpose.msk.msra.mxu1 %vm5442_vm4, %v4838_v47 }
 0xc31   : > { %4653 = vmatpush3.msra.mxu0 %v2533_v57 }
 0xc32   : > { %4657 = vmatprep.subr.mxu0 %v2532_v58 }
 0xc37   : > { %4686 = vmatmul.mubr.msk.f32.vlgmr.msra.gmra.mrb[18].mxu1 %vm1156_vm3, %v3390_v49 }
 0xc57   : > { %v3196_v50 = vpop.xlane.xlu0 %3195 }
 0xc58   : > { %v3200_v7 = vsub.f32 %v3192_v23, %v3196_v50 }
 0xc5a   : > { %v3202_v9 = vmul.f32 1.442695, %v3200_v7 }
 0xc5c   : > { %5065 = vpow2.f32 %v3202_v9 }
 0xc5f   : > { %v3199_v51 = vpop.xlane.xlu1 %3198 }
 0xc60   : > { %v3201_v52 = vsub.f32 %v3193_v25, %v3199_v51 }
 0xc62   : > { %v3204_v53 = vmul.f32 1.442695, %v3201_v52 }
 0xc63   : > { %v5005_v61 = vpop.permute.xlu1 %5004 }
 0xc64   : > { %5067 = vpow2.f32 %v3204_v53  ;;  %v5007_v0 = vunpack.i.h.bf16 %v5005_v61  ;;  %v5006_v1 = vunpack.i.l.bf16 %v5005_v61  ;;  %v3728_v61 = vld [vmem:[%s5369_s4 + $0x8] sm:$0xff] }
 0xc66   : > { %v5066_v54 = vpop.eup %5065  ;;  %v4832_v4 = vpack.c.bf16 %v5007_v0, %v5006_v1  ;;  %v3730_v0 = vld [vmem:[%s5369_s4 + $0x18] sm:$0xff] }
 0xc67   : > { %v3206_v55 = vsel %vm1242_vm6, %v5066_v54, 0.0  ;;  %v5010_v5 = vpop.permute.xlu1 %5009 }
 0xc68   : > { %3207 = vadd.xlane.f32.xlu0 %v3206_v55  ;;  %v5012_v13 = vunpack.i.h.bf16 %v5010_v5  ;;  %v5011_v16 = vunpack.i.l.bf16 %v5010_v5 }
 0xc6a   : > { %v4844_v24 = vpack.c.bf16 %v5012_v13, %v5011_v16  ;;  %v4371_v13 = vld [vmem:[%s5887_s5] ss:$0 sm:$0xff] }
 0xc6e   : > { %v5068_v56 = vpop.eup %5067 }
 0xc6f   : > { %v3209_v19 = vsel %vm1246_vm5, %v5068_v56, 0.0 }
 0xc70   : > { %3210 = vadd.xlane.f32.xlu0 %v3209_v19 }
 0xcf5   : > { %v3208_v59 = vpop.xlane.xlu0 %3207 }
 0xcf6   : > { %5069 = vrcp.f32 %v3208_v59 }
 0xcfd   : > { %v3211_v63 = vpop.xlane.xlu0 %3210 }
 0xcfe   : > { %v4637_v60 = vpop.f32.mrb[12].mxu0  ;;  %5071 = vrcp.f32 %v3211_v63  ;;  %v3729_v63 = vld [vmem:[%s5369_s4 + $0x10] sm:$0xff] }
 0xcff   : > { %v2727_v62 = vpop.f32.mrb[13].mxu0  ;;  %v4854_v1 = vpack.c.bf16 %v3730_v0, %v3729_v63 }
 0xd00   : > { %v5070_v8 = vpop.eup %5069 }
 0xd01   : > { %v3214_v22 = vmul.f32 %v5070_v8, %v5066_v54 }
 0xd03   : > { %v4651_v2 = vpop.f32.mrb[14].mxu0 }
 0xd04   : > { %v2930_v3 = vpop.f32.mrb[15].mxu0 }
 0xd05   : > { %4654 = vmatprep.mubr.msk.f32.mxu0 %vm1156_vm3, %v2930_v3 }
 0xd06   : > { %4655 = vmatmul.mubr.msk.f32.vlgmr.msra.gmra.mrb[16].mxu0 %vm1156_vm3, %v4651_v2 }
 0xd07   : > { %4658 = vmatpush3.msra.mxu0 %v2532_v58  ;;  %4659 = vmatprep.mubr.msk.f32.mxu0 %vm1156_vm3, %v2727_v62 }
 0xd08   : > { %4834 = vmatprep.subr.msk.bf16.mxu0 %vm5491_vm9, %v4832_v4  ;;  %v5072_v12 = vpop.eup %5071 }
 0xd09   : > { %v3215_v23 = vmul.f32 %v5072_v12, %v5068_v56 }
 0xd0a   : > { %v4687_v6 = vpop.f32.mrb[18].mxu1 }
 0xd0b   : > { %v3469_v10 = vpop.f32.mrb[19].mxu1  ;;  %v3479_v17 = vmul.f32 0.35355338, %v4687_v6 }
 0xd0c   : > { %v3478_v11 = vmul.f32 0.35355338, %v3469_v10 }
 0xd0d   : > { %v3483_v25 = vsel %vm1246_vm5, %v3479_v17, -inf }
 0xd0e   : > { %4660 = vmatmul.mubr.msk.f32.vlgmr.msra.gmra.mrb[16].mxu0 %vm1156_vm3, %v4637_v60  ;;  %v3480_v20 = vsel %vm1242_vm6, %v3478_v11, -inf  ;;  %v3727_v60 = vld [vmem:[%s5369_s4] sm:$0xff]  ;;  %s5885_s4 = scalar_lea.vmem %s5884_s15, %s5294_s1 }
 0xd0f   : > { %4837 = vmatpush3.bf16.msk.msra.mxu0 %vm5491_vm9, %v4832_v4  ;;  %3481 = vmax.xlane.f32.xlu0 %v3480_v20  ;;  %v4850_v62 = vpack.c.bf16 %v3728_v61, %v3727_v60 }
 0xd10   : > { %4673 = vmatprep.mubr.msk.f32.mxu0 %vm1242_vm6, %v3214_v22  ;;  %4676 = vmatprep.subr.mxu0 %v2534_v14 }
 0xd11   : > { %4851 = vmatprep.subr.bf16.mxu1 %v4850_v62 }
 0xd12   : > { %4674 = vmatmul.mubr.msk.f32.vlgmr.msra.gmra.mrb[18].mxu0 %vm1242_vm6, %v3215_v23  ;;  %4853 = vmatpush3.bf16.msra.mxu1 %v4850_v62 }
 0xd13   : > { %4677 = vmatpush3.msra.mxu0 %v2534_v14  ;;  %3484 = vmax.xlane.f32.xlu0 %v3483_v25  ;;  %v3830_v25 = vld [vmem:[%s5379_s13 + $0x8] sm:$0xff] }
 0xd14   : > { %4846 = vmatprep.subr.msk.bf16.mxu0 %vm5491_vm9, %v4844_v24  ;;  %4855 = vmatprep.subr.bf16.mxu1 %v4854_v1 }
 0xd16   : > { %4857 = vmatpush3.bf16.msra.mxu1 %v4854_v1 }
 0xd9c   : > { %v3482_v26 = vpop.xlane.xlu0 %3481 }
 0xd9d   : > { %v3486_v28 = vsub.f32 %v3478_v11, %v3482_v26  ;;  %v4370_v11 = vld [vmem:[%s5885_s4] ss:$0 sm:$0xff] }
 0xd9f   : > { %v3488_v29 = vmul.f32 1.442695, %v3486_v28  ;;  %v3831_v28 = vld [vmem:[%s5379_s13 + $0x10] sm:$0xff] }
 0xda0   : > { %v3485_v30 = vpop.xlane.xlu0 %3484 }
 0xda1   : > { %5073 = vpow2.f32 %v3488_v29  ;;  %v3487_v31 = vsub.f32 %v3479_v17, %v3485_v30  ;;  %v3832_v29 = vld [vmem:[%s5379_s13 + $0x18] sm:$0xff] }
 0xda2   : > { %v4862_v30 = vpack.c.bf16 %v3832_v29, %v3831_v28 }
 0xda3   : > { %v3490_v32 = vmul.f32 1.442695, %v3487_v31  ;;  %v3833_v31 = vld [vmem:[%s5379_s13 + $0x20] sm:$0xff] }
 0xda5   : > { %5075 = vpow2.f32 %v3490_v32  ;;  %v3834_v32 = vld [vmem:[%s5379_s13 + $0x28] sm:$0xff] }
 0xdab   : > { %v5074_v33 = vpop.eup %5073 }
 0xdac   : > { %v3492_v34 = vsel %vm1242_vm6, %v5074_v33, 0.0 }
 0xdad   : > { %3493 = vadd.xlane.f32.xlu0 %v3492_v34  ;;  %v3835_v34 = vld [vmem:[%s5379_s13 + $0x30] sm:$0xff] }
 0xdaf   : > { %v5076_v35 = vpop.eup %5075 }
 0xdb0   : > { %v3495_v36 = vsel %vm1246_vm5, %v5076_v35, 0.0 }
 0xdb1   : > { %3496 = vadd.xlane.f32.xlu0 %v3495_v36 }
 0xde5   : > { %v4675_v37 = vpop.f32.mrb[18].mxu0 }
 0xde6   : > { %v3295_v38 = vpop.f32.mrb[19].mxu0 }
 0xde7   : > { %4678 = vmatprep.mubr.msk.f32.mxu0 %vm1156_vm3, %v3295_v38 }
 0xde8   : > { %4679 = vmatmul.mubr.msk.f32.vlgmr.msra.gmra.mrb[16].mxu0 %vm1156_vm3, %v4675_v37  ;;  %v4372_v37 = vld [vmem:[%s5889_s21] ss:$0 sm:$0xff] }
 0xde9   : > { %4849 = vmatpush3.bf16.msk.msra.mxu0 %vm5491_vm9, %v4844_v24  ;;  %v3829_v24 = vld [vmem:[%s5379_s13] sm:$0xff] }
 0xdea   : > { %4695 = vmatprep.subr.mxu0 %v2535_v39  ;;  %v4858_v26 = vpack.c.bf16 %v3830_v25, %v3829_v24 }
 0xe3a   : > { %v3494_v27 = vpop.xlane.xlu0 %3493 }
 0xe3b   : > { %5077 = vrcp.f32 %v3494_v27 }
 0xe3e   : > { %v3497_v40 = vpop.xlane.xlu0 %3496 }
 0xe3f   : > { %5079 = vrcp.f32 %v3497_v40 }
 0xe45   : > { %v5078_v41 = vpop.eup %5077 }
 0xe46   : > { %v3500_v42 = vmul.f32 %v5078_v41, %v5074_v33  ;;  %v4866_v33 = vpack.c.bf16 %v3834_v32, %v3833_v31 }
 0xe48   : > { %4692 = vmatprep.mubr.msk.f32.mxu0 %vm1242_vm6, %v3500_v42 }
 0xe49   : > { %v5080_v43 = vpop.eup %5079 }
 0xe4a   : > { %v3501_v44 = vmul.f32 %v5080_v43, %v5076_v35  ;;  %v3836_v35 = vld [vmem:[%s5379_s13 + $0x38] sm:$0xff] }
 0xe4b   : > { %v4870_v36 = vpack.c.bf16 %v3836_v35, %v3835_v34 }
 0xe4c   : > { %4693 = vmatmul.mubr.msk.f32.vlgmr.msra.gmra.mrb[20].mxu0 %vm1242_vm6, %v3501_v44 }
 0xe4d   : > { %4696 = vmatpush3.msra.mxu0 %v2535_v39 }
 0xe4e   : > { %4859 = vmatprep.subr.bf16.mxu0 %v4858_v26 }
 0xf1f   : > { %v4694_v45 = vpop.f32.mrb[20].mxu0 }
 0xf20   : > { %v3581_v46 = vpop.f32.mrb[21].mxu0 }
 0xf21   : > { %4697 = vmatprep.mubr.msk.f32.mxu0 %vm1156_vm3, %v3581_v46 }
 0xf22   : > { %4698 = vmatmul.mubr.msk.f32.vlgmr.msra.gmra.mrb[16].mxu0 %vm1156_vm3, %v4694_v45 }
 0xf23   : > { %4861 = vmatpush3.bf16.msra.mxu0 %v4858_v26 }
 0xf24   : > { %4863 = vmatprep.subr.bf16.mxu0 %v4862_v30 }
 0xf27   : > { %4865 = vmatpush3.bf16.msra.mxu0 %v4862_v30 }
 0xf28   : > { %4867 = vmatprep.subr.bf16.mxu0 %v4866_v33 }
 0xf2b   : > { %4869 = vmatpush3.bf16.msra.mxu0 %v4866_v33 }
 0xf2c   : > { %4871 = vmatprep.subr.bf16.mxu0 %v4870_v36 }
 0xf2f   : > { %4873 = vmatpush3.bf16.msra.mxu0 %v4870_v36 }
 0xff5   : > { %v4699_v47 = vpop.f32.mrb[16].mxu0 }
 0xff6   : > { %v3680_v48 = vadd.f32 %v4699_v47, %v4369_v15  ;;  %v3662_v49 = vpop.f32.mrb[17].mxu0 }
 0xff7   : > { %v3679_v50 = vadd.f32 %v4369_v15, %v3662_v49 }
 0xff8   : > { %v3682_v7 = vadd.f32 %v3680_v48, %v5581_v21 }
 0xff9   : > { %v3681_v9 = vadd.f32 %v3679_v50, %v5577_v18  ;;  %v4375_v50 = vld [vmem:[%s1026_s23] ss:$0 sm:$0xff] }
 0xffa   : > { %v3688_v51 = vsel %vm2307_vm10, %v3682_v7, 0.0 }
 0xffb   : > { %3689 = vadd.xlane.f32.xlu1 %v3688_v51  ;;  %v3685_v52 = vsel %vm1063_vm2, %v3681_v9, 0.0 }
 0xffc   : > { %3686 = vadd.xlane.f32.xlu0 %v3685_v52 }
0x1088   : > { %v3690_v53 = vpop.xlane.xlu1 %3689 }
0x1089   : > { %v3692_v54 = vmul.f32 0.03125, %v3690_v53  ;;  %v3687_v55 = vpop.xlane.xlu0 %3686 }
0x108a   : > { %v3691_v56 = vmul.f32 0.03125, %v3687_v55 }
0x108b   : > { %v3694_v19 = vsub.f32 %v3682_v7, %v3692_v54 }
0x108c   : > { %v3693_v57 = vsub.f32 %v3681_v9, %v3691_v56 }
0x108d   : > { %v3696_v18 = vmul.f32 %v3694_v19, %v3694_v19 }
0x108e   : > { %v3695_v58 = vmul.f32 %v3693_v57, %v3693_v57 }
0x108f   : > { %v3700_v59 = vsel %vm2307_vm10, %v3696_v18, 0.0 }
0x1090   : > { %v3697_v21 = vsel %vm1063_vm2, %v3695_v58, 0.0 }
0x1091   : > { %3698 = vadd.xlane.f32.xlu0 %v3697_v21 }
0x1095   : > { %3701 = vadd.xlane.f32.xlu0 %v3700_v59 }
0x111e   : > { %v3699_v2 = vpop.xlane.xlu0 %3698 }
0x111f   : > { %v3703_v3 = vmul.f32 0.03125, %v3699_v2 }
0x1121   : > { %v3705_v4 = vadd.f32 1e-05, %v3703_v3 }
0x1122   : > { %v3702_v5 = vpop.xlane.xlu0 %3701 }
0x1123   : > { %5081 = vrsqrt.f32 %v3705_v4  ;;  %v3704_v6 = vmul.f32 0.03125, %v3702_v5 }
0x1125   : > { %v3706_v8 = vadd.f32 1e-05, %v3704_v6 }
0x1127   : > { %5083 = vrsqrt.f32 %v3706_v8  ;;  %v4378_v8 = vld [vmem:[%s1029_s10] ss:$0 sm:$0xff] }
0x112d   : > { %v5082_v10 = vpop.eup %5081 }
0x112e   : > { %v3709_v12 = vmul.f32 %v5082_v10, %v3693_v57 }
0x1130   : > { %v3717_v14 = vmul.f32 %v4370_v11, %v3709_v12 }
0x1131   : > { %v5084_v16 = vpop.eup %5083 }
0x1132   : > { %v3710_v17 = vmul.f32 %v5084_v16, %v3694_v19  ;;  %v3725_v20 = vadd.f32 %v4371_v13, %v3717_v14 }
0x1134   : > { %v3718_v22 = vmul.f32 %v4370_v11, %v3710_v17  ;;  %4708 = vmatprep.mubr.msk.f32.mxu1 %vm1063_vm2, %v3725_v20  ;;  %v4379_v11 = vld [vmem:[%s1032_s14] ss:$0 sm:$0xff] }
0x1136   : > { %v3726_v23 = vadd.f32 %v4371_v13, %v3718_v22 }
0x1138   : > { %4709 = vmatmul.mubr.msk.f32.vlgmr.msra.gmra.mrb[20].mxu1 %vm1063_vm2, %v3726_v23 }
0x120b   : > { %v4710_v38 = vpop.f32.mrb[20].mxu1 }
0x120c   : > { %v3816_v39 = vadd.f32 %v4710_v38, %v4372_v37  ;;  %v3810_v27 = vpop.f32.mrb[21].mxu1 }
0x120d   : > { %v3811_v40 = vadd.f32 %v4372_v37, %v3810_v27 }
0x120e   : > { %v3822_v41 = vmul.f32 0.70710677, %v3816_v39  ;;  %v3820_v47 = vmul.f32 0.5, %v3816_v39 }
0x120f   : > { %v3821_v42 = vmul.f32 0.70710677, %v3811_v40  ;;  %v3819_v46 = vmul.f32 0.5, %v3811_v40 }
0x1210   : > { %5085 = verf.f32 %v3822_v41 }
0x1211   : > { %5087 = verf.f32 %v3821_v42 }
0x121a   : > { %v5086_v43 = vpop.eup %5085 }
0x121b   : > { %v5088_v44 = vpop.eup %5087  ;;  %v3826_v45 = vadd.f32 1.0, %v5086_v43 }
0x121c   : > { %v3825_v15 = vadd.f32 1.0, %v5088_v44 }
0x121d   : > { %v3828_v49 = vmul.f32 %v3826_v45, %v3820_v47 }
0x121e   : > { %v3827_v48 = vmul.f32 %v3825_v15, %v3819_v46 }
0x1220   : > { %4727 = vmatprep.mubr.msk.f32.mxu0 %vm3844_vm11, %v3827_v48 }
0x1221   : > { %4728 = vmatmul.mubr.msk.f32.vlgmr.msra.gmra.mrb[22].mxu0 %vm3844_vm11, %v3828_v49 }
0x12f4   : > { %v4729_v7 = vpop.f32.mrb[22].mxu0 }
0x12f5   : > { %v3917_v9 = vpop.f32.mrb[23].mxu0  ;;  %v3923_v51 = vadd.f32 %v4729_v7, %v4375_v50 }
0x12f6   : > { %v3918_v52 = vadd.f32 %v4375_v50, %v3917_v9 }
0x12f7   : > { %v3927_v55 = vadd.f32 %v3923_v51, %v3726_v23 }
0x12f8   : > { %v3926_v53 = vadd.f32 %v3918_v52, %v3725_v20 }
0x12f9   : > { %v3933_v56 = vsel %vm2307_vm10, %v3927_v55, 0.0 }
0x12fa   : > { %v3930_v54 = vsel %vm1063_vm2, %v3926_v53, 0.0 }
0x12fb   : > { %3931 = vadd.xlane.f32.xlu0 %v3930_v54 }
0x12ff   : > { %3934 = vadd.xlane.f32.xlu0 %v3933_v56 }
0x1388   : > { %v3932_v19 = vpop.xlane.xlu0 %3931 }
0x1389   : > { %v3936_v57 = vmul.f32 0.03125, %v3932_v19 }
0x138b   : > { %v3938_v58 = vsub.f32 %v3926_v53, %v3936_v57 }
0x138c   : > { %v3935_v21 = vpop.xlane.xlu0 %3934 }
0x138d   : > { %v3937_v18 = vmul.f32 0.03125, %v3935_v21  ;;  %v3940_v59 = vmul.f32 %v3938_v58, %v3938_v58 }
0x138f   : > { %v3939_v60 = vsub.f32 %v3927_v55, %v3937_v18  ;;  %v3942_v61 = vsel %vm1063_vm2, %v3940_v59, 0.0 }
0x1390   : > { %3943 = vadd.xlane.f32.xlu0 %v3942_v61 }
0x1391   : > { %v3941_v62 = vmul.f32 %v3939_v60, %v3939_v60 }
0x1393   : > { %v3945_v63 = vsel %vm2307_vm10, %v3941_v62, 0.0 }
0x1394   : > { %3946 = vadd.xlane.f32.xlu0 %v3945_v63 }
0x141d   : > { %v3944_v0 = vpop.xlane.xlu0 %3943 }
0x141e   : > { %v3948_v1 = vmul.f32 0.03125, %v3944_v0 }
0x1420   : > { %v3950_v2 = vadd.f32 1e-05, %v3948_v1 }
0x1421   : > { %v3947_v3 = vpop.xlane.xlu0 %3946 }
0x1422   : > { %5089 = vrsqrt.f32 %v3950_v2  ;;  %v3949_v4 = vmul.f32 0.03125, %v3947_v3 }
0x1424   : > { %v3951_v5 = vadd.f32 1e-05, %v3949_v4 }
0x1426   : > { %5091 = vrsqrt.f32 %v3951_v5 }
0x142c   : > { %v5090_v6 = vpop.eup %5089 }
0x142d   : > { %v3954_v10 = vmul.f32 %v5090_v6, %v3938_v58 }
0x142f   : > { %v3962_v12 = vmul.f32 %v4378_v8, %v3954_v10 }
0x1430   : > { %v5092_v13 = vpop.eup %5091 }
0x1431   : > { %v3970_v14 = vadd.f32 %v4379_v11, %v3962_v12  ;;  %v3955_v16 = vmul.f32 %v5092_v13, %v3939_v60  ;;  %3977 = sbr.rel (%p4380_p8) target bundleno = 5176 (0x1438), region = 116 }
0x1433   : > { %3972 = vst.msk [vmem:[#allocation2] sm:$0xff] %vm1063_vm2, %v3970_v14  ;;  %v3963_v17 = vmul.f32 %v4378_v8, %v3955_v16  ;;  %3978 = vst.msk [vmem:[%s5396_s12] sm:$0xff] (!%p4380_p8), %vm1063_vm2, %v3970_v14 }
0x1435   : > { %v3971_v20 = vadd.f32 %v4379_v11, %v3963_v17 }
0x1437   : > { %3973 = vst.msk [vmem:[#allocation2 + $0x8] sm:$0x1] %vm2307_vm10, %v3971_v20  ;;  %3979 = vst.msk [vmem:[%s5396_s12 + $0x8] sm:$0x1] (!%p4380_p8), %vm2307_vm10, %v3971_v20 }
0x1438 PF: > { %s5894_s14 = sld [smem:[#allocation6_spill]]  ;;  %s5895_s3 = sld [smem:[#allocation4_spill]] }
0x1439   : > { %s5896_s28 = sld [smem:[#allocation5_spill]]  ;;  %s5897_s29 = sld [smem:[#allocation7_spill]] }
0x143a   : > { %s5898_s30 = sld [smem:[#allocation8_spill]] }
0x143e   : > { %s32_s4 = sadd.s32 1, %s5894_s14  }
0x143f   : > { %p29_p9 = scmp.ge.s32.totalorder %s32_s4, 6  }
0x1441   :  { %31 = sbr.rel (!%p29_p9) target bundleno = 21 (0x15), region = 209 }

</bundles_post_ra>
